<compile_context>
chip_gen: v7x
topology: tpu7x:2x2x1
jax: 0.10.0
libtpu: 0.0.40
codegen_flags: <defaults>
</compile_context>

<pallas_src>
import jax
import jax.numpy as jnp
from jax.experimental import pallas as pl
from jax.experimental.pallas import tpu as pltpu


def _round_up(x, m):
    return ((x + m - 1) // m) * m


# ---------------------------------------------------------------------------
# Pallas kernels
# ---------------------------------------------------------------------------

def _conv_pool_kernel(p_ref, w_ref, o_ref):
    """Fused conv (as matmul) + bias + ReLU + 2x2 max-pool.

    p_ref : (bm, K_pad)      bf16 shared 6x6-window patches (+ ones bias col).
    w_ref : (4, K_pad, 128)  bf16 offset weight matrices (bias folded in).
    o_ref : (bm, 128)        f32  pooled, ReLU'd output (lane-dense Cout).
    """
    p = p_ref[...]
    r = None
    for off in range(4):                       # static unroll, 4 MXU matmuls
        acc = jnp.dot(p, w_ref[off], preferred_element_type=jnp.float32)
        r = acc if r is None else jnp.maximum(r, acc)
    # relu(max(.)) == max(relu(.)) -> single ReLU after the pairwise max.
    o_ref[...] = jnp.maximum(r, 0.0).astype(o_ref.dtype)


def _fc_stack_kernel(x_ref, w1_ref, b1_ref, w2_ref, b2_ref, w3_ref, b3_ref,
                     o_ref):
    """fc1 -> ReLU -> fc2 -> ReLU -> fc3 on one batch tile; weights resident."""
    h = jnp.dot(x_ref[...], w1_ref[...], preferred_element_type=jnp.float32)
    h = jnp.maximum(h + b1_ref[...], 0.0)
    h = jnp.dot(h.astype(jnp.bfloat16), w2_ref[...],
                preferred_element_type=jnp.float32)
    h = jnp.maximum(h + b2_ref[...], 0.0)
    out = jnp.dot(h.astype(jnp.bfloat16), w3_ref[...],
                  preferred_element_type=jnp.float32)
    o_ref[...] = (out + b3_ref[...]).astype(o_ref.dtype)


# ---------------------------------------------------------------------------
# Glue: shared 6x6-window patch extraction (pure data movement, XLA)
# ---------------------------------------------------------------------------

def _pool_window_patches(x_nhwc, kh=5, pool=2):
    """x: (B, H, W, Cin) NHWC -> (B*Hp*Wp, Cin*36) patch matrix over the 6x6
    receptive window of each pooled output pixel.  Feature order is
    (wy, wx, ci), matching the offset weight matrices built in _conv_prep."""
    bsz, h, w, cin = x_nhwc.shape
    ho, wo = h - kh + 1, w - kh + 1
    hp, wp = ho // pool, wo // pool
    win = kh + pool - 1                        # 6
    cols = []
    for wy in range(win):
        for wx in range(win):
            cols.append(x_nhwc[:, wy:wy + pool * hp:pool,
                               wx:wx + pool * wp:pool, :])   # (B,Hp,Wp,Cin)
    p = jnp.stack(cols, axis=3)                # (B, Hp, Wp, 36, Cin)
    p = p.reshape(bsz * hp * wp, win * win * cin)
    return p, hp, wp


def pallas_conv_relu_pool(x_nhwc, w_stack, cout, *, block_m=1024):
    """x: (B,H,W,Cin) NHWC; w_stack: (4, K_pad, 128) bf16 (bias folded).
    Returns pooled, ReLU'd conv output in NHWC: (B, Hp, Wp, cout)."""
    bsz = x_nhwc.shape[0]
    k_pad = w_stack.shape[1]
    p, hp, wp = _pool_window_patches(x_nhwc)
    m, k = p.shape

    bm = min(block_m, _round_up(m, 16))        # bf16-friendly sublane tile
    m_pad = _round_up(m, bm)                   # every block is full

    ones = jnp.ones((m, 1), p.dtype)           # bias column (folded bias)
    p = jnp.concatenate([p, ones], axis=1)
    p = jnp.pad(p, ((0, m_pad - m), (0, k_pad - (k + 1))))
    p = p.astype(jnp.bfloat16)

    grid = (m_pad // bm,)
    out = pl.pallas_call(
        _conv_pool_kernel,
        out_shape=jax.ShapeDtypeStruct((m_pad, 128), jnp.float32),
        grid=grid,
        in_specs=[pl.BlockSpec((bm, k_pad), lambda i: (i, 0)),
                  pl.BlockSpec((4, k_pad, 128), lambda i: (0, 0, 0))],
        out_specs=pl.BlockSpec((bm, 128), lambda i: (i, 0)),
        compiler_params=pltpu.CompilerParams(
            dimension_semantics=("parallel",)),
    )(p, w_stack)

    # (M_pad, 128) -> (B, Hp, Wp, cout)   (row order is already (b, yp, xp))
    return out[:m, :cout].reshape(bsz, hp, wp, cout)


def pallas_fc_stack(x, w1, b1, w2, b2, w3, b3, n_out, *, block_b=512):
    """x: (B, 256) with (y,x,c)-ordered features -> (B, n_out)."""
    bsz, feat = x.shape
    n_pad = w3.shape[1]
    bm = min(block_b, _round_up(bsz, 16))
    b_pad = _round_up(bsz, bm)
    x = jnp.pad(x, ((0, b_pad - bsz), (0, 0))).astype(jnp.bfloat16)

    def const_spec(arr):
        s = arr.shape
        return pl.BlockSpec(s, lambda i, _s=s: (0,) * len(_s))

    out = pl.pallas_call(
        _fc_stack_kernel,
        out_shape=jax.ShapeDtypeStruct((b_pad, n_pad), jnp.float32),
        grid=(b_pad // bm,),
        in_specs=[pl.BlockSpec((bm, feat), lambda i: (i, 0)),
                  const_spec(w1), const_spec(b1),
                  const_spec(w2), const_spec(b2),
                  const_spec(w3), const_spec(b3)],
        out_specs=pl.BlockSpec((bm, n_pad), lambda i: (i, 0)),
        compiler_params=pltpu.CompilerParams(
            dimension_semantics=("parallel",)),
    )(x, w1, b1, w2, b2, w3, b3)
    return out[:bsz, :n_out]


# ---------------------------------------------------------------------------
# Parameters
# ---------------------------------------------------------------------------

def init_lenet5_params(key):
    ks = jax.random.split(key, 10)

    def uni(k, shape, fan_in):
        bound = 1.0 / jnp.sqrt(jnp.float32(fan_in))
        return jax.random.uniform(k, shape, jnp.float32, -bound, bound)

    return {
        "conv1_w": uni(ks[0], (6, 1, 5, 5), 1 * 5 * 5),
        "conv1_b": uni(ks[1], (6,), 1 * 5 * 5),
        "conv2_w": uni(ks[2], (16, 6, 5, 5), 6 * 5 * 5),
        "conv2_b": uni(ks[3], (16,), 6 * 5 * 5),
        "fc1_w": uni(ks[4], (120, 256), 256),
        "fc1_b": uni(ks[5], (120,), 256),
        "fc2_w": uni(ks[6], (84, 120), 120),
        "fc2_b": uni(ks[7], (84,), 120),
        "fc3_w": uni(ks[8], (10, 84), 84),
        "fc3_b": uni(ks[9], (10,), 84),
    }


def _conv_prep(w, b):
    """(Cout,Cin,5,5) + (Cout,) -> (4, K_pad, 128) bf16 offset matrices.

    For pool offset (dy,dx), tap (ky,kx) lands at 6x6-window position
    (dy+ky, dx+kx); row order is (wy, wx, ci) to match _pool_window_patches.
    The bias sits in the extra K row hit by the patch matrix's ones column."""
    cout, cin, kh, kw = w.shape
    win_h, win_w = kh + 1, kw + 1              # 6x6 pooled receptive window
    k = cin * win_h * win_w
    k_pad = _round_up(k + 1, 128)
    cout_pad = 128
    w_hwio = jnp.transpose(w, (2, 3, 1, 0))    # (kh, kw, cin, cout)
    mats = []
    for dy in range(2):
        for dx in range(2):
            m = jnp.zeros((win_h, win_w, cin, cout), jnp.float32)
            m = m.at[dy:dy + kh, dx:dx + kw].set(w_hwio)
            m = m.reshape(k, cout)
            full = jnp.zeros((k_pad, cout_pad), jnp.float32)
            full = full.at[:k, :cout].set(m)
            full = full.at[k, :cout].set(b)    # folded bias row
            mats.append(full)
    return jnp.stack(mats, axis=0).astype(jnp.bfloat16)


def _fc_prep(w, b, k_pad, n_pad):
    n, k = w.shape
    w_t = jnp.pad(w.T, ((0, k_pad - k), (0, n_pad - n))).astype(jnp.bfloat16)
    b_p = jnp.pad(b, (0, n_pad - n)).reshape(1, n_pad).astype(jnp.float32)
    return w_t, b_p


def prepare_lenet5_params(p):
    """One-time layout prep (numerics preserved up to bf16 operand cast)."""
    c1 = _conv_prep(p["conv1_w"], p["conv1_b"])
    c2 = _conv_prep(p["conv2_w"], p["conv2_b"])
    # fc1 input features: PyTorch flatten order is (c,y,x) on NCHW; our conv2
    # output flattens NHWC as (y,x,c) -> permute fc1's input dim once here.
    w1 = p["fc1_w"].reshape(120, 16, 4, 4).transpose(0, 2, 3, 1).reshape(120, 256)
    f1w, f1b = _fc_prep(w1, p["fc1_b"], 256, 128)
    f2w, f2b = _fc_prep(p["fc2_w"], p["fc2_b"], 128, 128)
    f3w, f3b = _fc_prep(p["fc3_w"], p["fc3_b"], 128, 128)
    return {
        "conv1_w": c1, "conv2_w": c2,
        "fc1_w": f1w, "fc1_b": f1b,
        "fc2_w": f2w, "fc2_b": f2b,
        "fc3_w": f3w, "fc3_b": f3b,
    }


# ---------------------------------------------------------------------------
# LeNet-5 forward
# ---------------------------------------------------------------------------

def lenet5_forward(prep, x):
    # NCHW -> NHWC once; activations stay NHWC end-to-end (no per-layer
    # transposes between the conv kernels / fc stack).
    x = jnp.transpose(x, (0, 2, 3, 1))
    # conv1 + ReLU + pool (fused):  (B,28,28,1) -> (B,12,12,6)
    x = pallas_conv_relu_pool(x, prep["conv1_w"], 6)
    # conv2 + ReLU + pool (fused):  (B,12,12,6) -> (B,4,4,16)
    x = pallas_conv_relu_pool(x, prep["conv2_w"], 16)
    # NHWC flatten (fc1 weight was pre-permuted to (y,x,c) feature order)
    x = x.reshape(x.shape[0], 4 * 4 * 16)
    # fused fc1 -> fc2 -> fc3, tiled over batch
    return pallas_fc_stack(x, prep["fc1_w"], prep["fc1_b"],
                           prep["fc2_w"], prep["fc2_b"],
                           prep["fc3_w"], prep["fc3_b"], 10)


# ---------------------------------------------------------------------------
# Pure-JAX f32 reference (PyTorch semantics) for a correctness sanity check
# ---------------------------------------------------------------------------

def lenet5_reference(params, x):
    def conv(x, w, b):
        y = jax.lax.conv_general_dilated(
            x, w, (1, 1), "VALID",
            dimension_numbers=("NCHW", "OIHW", "NCHW"))
        return jax.nn.relu(y + b.reshape(1, -1, 1, 1))

    def pool(x):
        return jax.lax.reduce_window(x, -jnp.inf, jax.lax.max,
                                     (1, 1, 2, 2), (1, 1, 2, 2), "VALID")

    x = pool(conv(x, params["conv1_w"], params["conv1_b"]))
    x = pool(conv(x, params["conv2_w"], params["conv2_b"]))
    x = x.reshape(-1, 16 * 4 * 4)
    x = jax.nn.relu(x @ params["fc1_w"].T + params["fc1_b"])
    x = jax.nn.relu(x @ params["fc2_w"].T + params["fc2_b"])
    return x @ params["fc3_w"].T + params["fc3_b"]


if __name__ == "__main__":
    key = jax.random.PRNGKey(0)
    k_param, k_input = jax.random.split(key)
    params = init_lenet5_params(k_param)
    prep = prepare_lenet5_params(params)
    # LeNet-5's fc1 dimensions force 28x28 single-channel input; batch=2.
    x = jax.random.normal(k_input, (2, 1, 28, 28), dtype=jnp.float32)

    out = jax.jit(lenet5_forward)(prep, x)
    out = jax.block_until_ready(out)
    assert out.shape == (2, 10) and out.dtype == jnp.float32

    ref = lenet5_reference(params, x)
    max_err = float(jnp.max(jnp.abs(out - ref)))
    # bf16 operands / f32 accumulation vs. the f32 reference.
    assert jnp.allclose(out, ref, atol=5e-2, rtol=5e-2), max_err
    print("KERNEL_OK")
</pallas_src>

<mosaic_0001>
module attributes {stable_mosaic.version = 11 : i64} {
  func.func @_conv_pool_kernel(%arg0: i32, %arg1: memref<288x128xbf16, #tpu.memory_space<vmem>>, %arg2: memref<4x128x128xbf16, #tpu.memory_space<vmem>>, %arg3: memref<288x128xf32, #tpu.memory_space<vmem>>) attributes {dimension_semantics = [#tpu.dimension_semantics<parallel>], iteration_bounds = array<i64: 1>, scalar_prefetch = 0 : i64, scratch_operands = 0 : i64, tpu.core_type = #tpu.core_type<tc>, window_params = [{transform_indices = @transform_0, window_bounds = array<i64: 288, 128>}, {pipeline_mode = #tpu.pipeline_mode<synchronous>, transform_indices = @transform_1, window_bounds = array<i64: 4, 128, 128>}, {transform_indices = @transform_2, window_bounds = array<i64: 288, 128>}]} {
    %c0 = arith.constant 0 : index
    %c0_0 = arith.constant 0 : index
    %0 = vector.load %arg1[%c0, %c0_0] : memref<288x128xbf16, #tpu.memory_space<vmem>>, vector<288x128xbf16>
    %c0_1 = arith.constant 0 : index
    %c0_2 = arith.constant 0 : index
    %c0_3 = arith.constant 0 : index
    %1 = vector.load %arg2[%c0_1, %c0_2, %c0_3] : memref<4x128x128xbf16, #tpu.memory_space<vmem>>, vector<1x128x128xbf16>
    %2 = vector.shape_cast %1 : vector<1x128x128xbf16> to vector<128x128xbf16>
    %cst = arith.constant dense<0.000000e+00> : vector<288x128xf32>
    %3 = tpu.matmul %0, %2, %cst {dimension_numbers = #tpu.dot_dimension_numbers<[1], [0], [0], [1], [0, 0, 1, 1], [], []>} : vector<288x128xbf16>, vector<128x128xbf16>, vector<288x128xf32> -> vector<288x128xf32>
    %c1 = arith.constant 1 : index
    %c0_4 = arith.constant 0 : index
    %c0_5 = arith.constant 0 : index
    %4 = vector.load %arg2[%c1, %c0_4, %c0_5] : memref<4x128x128xbf16, #tpu.memory_space<vmem>>, vector<1x128x128xbf16>
    %5 = vector.shape_cast %4 : vector<1x128x128xbf16> to vector<128x128xbf16>
    %cst_6 = arith.constant dense<0.000000e+00> : vector<288x128xf32>
    %6 = tpu.matmul %0, %5, %cst_6 {dimension_numbers = #tpu.dot_dimension_numbers<[1], [0], [0], [1], [0, 0, 1, 1], [], []>} : vector<288x128xbf16>, vector<128x128xbf16>, vector<288x128xf32> -> vector<288x128xf32>
    %7 = arith.maximumf %3, %6 : vector<288x128xf32>
    %c2 = arith.constant 2 : index
    %c0_7 = arith.constant 0 : index
    %c0_8 = arith.constant 0 : index
    %8 = vector.load %arg2[%c2, %c0_7, %c0_8] : memref<4x128x128xbf16, #tpu.memory_space<vmem>>, vector<1x128x128xbf16>
    %9 = vector.shape_cast %8 : vector<1x128x128xbf16> to vector<128x128xbf16>
    %cst_9 = arith.constant dense<0.000000e+00> : vector<288x128xf32>
    %10 = tpu.matmul %0, %9, %cst_9 {dimension_numbers = #tpu.dot_dimension_numbers<[1], [0], [0], [1], [0, 0, 1, 1], [], []>} : vector<288x128xbf16>, vector<128x128xbf16>, vector<288x128xf32> -> vector<288x128xf32>
    %11 = arith.maximumf %7, %10 : vector<288x128xf32>
    %c3 = arith.constant 3 : index
    %c0_10 = arith.constant 0 : index
    %c0_11 = arith.constant 0 : index
    %12 = vector.load %arg2[%c3, %c0_10, %c0_11] : memref<4x128x128xbf16, #tpu.memory_space<vmem>>, vector<1x128x128xbf16>
    %13 = vector.shape_cast %12 : vector<1x128x128xbf16> to vector<128x128xbf16>
    %cst_12 = arith.constant dense<0.000000e+00> : vector<288x128xf32>
    %14 = tpu.matmul %0, %13, %cst_12 {dimension_numbers = #tpu.dot_dimension_numbers<[1], [0], [0], [1], [0, 0, 1, 1], [], []>} : vector<288x128xbf16>, vector<128x128xbf16>, vector<288x128xf32> -> vector<288x128xf32>
    %15 = arith.maximumf %11, %14 : vector<288x128xf32>
    %cst_13 = arith.constant 0.000000e+00 : f32
    %16 = vector.broadcast %cst_13 : f32 to vector<288x128xf32>
    %17 = arith.maximumf %15, %16 : vector<288x128xf32>
    %c0_14 = arith.constant 0 : index
    %c0_15 = arith.constant 0 : index
    %18 = vector.load %arg3[%c0_14, %c0_15] : memref<288x128xf32, #tpu.memory_space<vmem>>, vector<288x128xf32>
    tpu.vector_store %arg3[%c0_14, %c0_15], %17 {strides = array<i32>} : memref<288x128xf32, #tpu.memory_space<vmem>>, vector<288x128xf32>,
    return
  }
  func.func @transform_0(%arg0: i32) -> (i32, i32) {
    %c0_i32 = arith.constant 0 : i32
    %c0_i32_0 = arith.constant 0 : i32
    return %arg0, %c0_i32 : i32, i32
  }
  func.func @transform_1(%arg0: i32) -> (i32, i32, i32) {
    %c0_i32 = arith.constant 0 : i32
    %c0_i32_0 = arith.constant 0 : i32
    %c0_i32_1 = arith.constant 0 : i32
    %c0_i32_2 = arith.constant 0 : i32
    return %c0_i32, %c0_i32_0, %c0_i32_1 : i32, i32, i32
  }
  func.func @transform_2(%arg0: i32) -> (i32, i32) {
    %c0_i32 = arith.constant 0 : i32
    %c0_i32_0 = arith.constant 0 : i32
    return %arg0, %c0_i32 : i32, i32
  }
}

module attributes {stable_mosaic.version = 11 : i64} {
  func.func @_fc_stack_kernel(%arg0: i32, %arg1: memref<16x256xbf16, #tpu.memory_space<vmem>>, %arg2: memref<256x128xbf16, #tpu.memory_space<vmem>>, %arg3: memref<1x128xf32, #tpu.memory_space<vmem>>, %arg4: memref<128x128xbf16, #tpu.memory_space<vmem>>, %arg5: memref<1x128xf32, #tpu.memory_space<vmem>>, %arg6: memref<128x128xbf16, #tpu.memory_space<vmem>>, %arg7: memref<1x128xf32, #tpu.memory_space<vmem>>, %arg8: memref<16x128xf32, #tpu.memory_space<vmem>>) attributes {dimension_semantics = [#tpu.dimension_semantics<parallel>], iteration_bounds = array<i64: 1>, scalar_prefetch = 0 : i64, scratch_operands = 0 : i64, tpu.core_type = #tpu.core_type<tc>, window_params = [{transform_indices = @transform_0, window_bounds = array<i64: 16, 256>}, {pipeline_mode = #tpu.pipeline_mode<synchronous>, transform_indices = @transform_1, window_bounds = array<i64: 256, 128>}, {pipeline_mode = #tpu.pipeline_mode<synchronous>, transform_indices = @transform_2, window_bounds = array<i64: 1, 128>}, {pipeline_mode = #tpu.pipeline_mode<synchronous>, transform_indices = @transform_3, window_bounds = array<i64: 128, 128>}, {pipeline_mode = #tpu.pipeline_mode<synchronous>, transform_indices = @transform_4, window_bounds = array<i64: 1, 128>}, {pipeline_mode = #tpu.pipeline_mode<synchronous>, transform_indices = @transform_5, window_bounds = array<i64: 128, 128>}, {pipeline_mode = #tpu.pipeline_mode<synchronous>, transform_indices = @transform_6, window_bounds = array<i64: 1, 128>}, {transform_indices = @transform_7, window_bounds = array<i64: 16, 128>}]} {
    %c0 = arith.constant 0 : index
    %c0_0 = arith.constant 0 : index
    %0 = vector.load %arg1[%c0, %c0_0] : memref<16x256xbf16, #tpu.memory_space<vmem>>, vector<16x256xbf16>
    %c0_1 = arith.constant 0 : index
    %c0_2 = arith.constant 0 : index
    %1 = vector.load %arg2[%c0_1, %c0_2] : memref<256x128xbf16, #tpu.memory_space<vmem>>, vector<256x128xbf16>
    %cst = arith.constant dense<0.000000e+00> : vector<16x128xf32>
    %2 = tpu.matmul %0, %1, %cst {dimension_numbers = #tpu.dot_dimension_numbers<[1], [0], [0], [1], [0, 0, 1, 1], [], []>} : vector<16x256xbf16>, vector<256x128xbf16>, vector<16x128xf32> -> vector<16x128xf32>
    %c0_3 = arith.constant 0 : index
    %c0_4 = arith.constant 0 : index
    %3 = vector.load %arg3[%c0_3, %c0_4] : memref<1x128xf32, #tpu.memory_space<vmem>>, vector<1x128xf32>
    %4 = vector.broadcast %3 : vector<1x128xf32> to vector<16x128xf32>
    %5 = arith.addf %2, %4 : vector<16x128xf32>
    %cst_5 = arith.constant 0.000000e+00 : f32
    %6 = vector.broadcast %cst_5 : f32 to vector<16x128xf32>
    %7 = arith.maximumf %5, %6 : vector<16x128xf32>
    %8 = arith.truncf %7 : vector<16x128xf32> to vector<16x128xbf16>
    %c0_6 = arith.constant 0 : index
    %c0_7 = arith.constant 0 : index
    %9 = vector.load %arg4[%c0_6, %c0_7] : memref<128x128xbf16, #tpu.memory_space<vmem>>, vector<128x128xbf16>
    %cst_8 = arith.constant dense<0.000000e+00> : vector<16x128xf32>
    %10 = tpu.matmul %8, %9, %cst_8 {dimension_numbers = #tpu.dot_dimension_numbers<[1], [0], [0], [1], [0, 0, 1, 1], [], []>} : vector<16x128xbf16>, vector<128x128xbf16>, vector<16x128xf32> -> vector<16x128xf32>
    %c0_9 = arith.constant 0 : index
    %c0_10 = arith.constant 0 : index
    %11 = vector.load %arg5[%c0_9, %c0_10] : memref<1x128xf32, #tpu.memory_space<vmem>>, vector<1x128xf32>
    %12 = vector.broadcast %11 : vector<1x128xf32> to vector<16x128xf32>
    %13 = arith.addf %10, %12 : vector<16x128xf32>
    %cst_11 = arith.constant 0.000000e+00 : f32
    %14 = vector.broadcast %cst_11 : f32 to vector<16x128xf32>
    %15 = arith.maximumf %13, %14 : vector<16x128xf32>
    %16 = arith.truncf %15 : vector<16x128xf32> to vector<16x128xbf16>
    %c0_12 = arith.constant 0 : index
    %c0_13 = arith.constant 0 : index
    %17 = vector.load %arg6[%c0_12, %c0_13] : memref<128x128xbf16, #tpu.memory_space<vmem>>, vector<128x128xbf16>
    %cst_14 = arith.constant dense<0.000000e+00> : vector<16x128xf32>
    %18 = tpu.matmul %16, %17, %cst_14 {dimension_numbers = #tpu.dot_dimension_numbers<[1], [0], [0], [1], [0, 0, 1, 1], [], []>} : vector<16x128xbf16>, vector<128x128xbf16>, vector<16x128xf32> -> vector<16x128xf32>
    %c0_15 = arith.constant 0 : index
    %c0_16 = arith.constant 0 : index
    %19 = vector.load %arg7[%c0_15, %c0_16] : memref<1x128xf32, #tpu.memory_space<vmem>>, vector<1x128xf32>
    %20 = vector.broadcast %19 : vector<1x128xf32> to vector<16x128xf32>
    %21 = arith.addf %18, %20 : vector<16x128xf32>
    %c0_17 = arith.constant 0 : index
    %c0_18 = arith.constant 0 : index
    %22 = vector.load %arg8[%c0_17, %c0_18] : memref<16x128xf32, #tpu.memory_space<vmem>>, vector<16x128xf32>
    tpu.vector_store %arg8[%c0_17, %c0_18], %21 {strides = array<i32>} : memref<16x128xf32, #tpu.memory_space<vmem>>, vector<16x128xf32>,
    return
  }
  func.func @transform_0(%arg0: i32) -> (i32, i32) {
    %c0_i32 = arith.constant 0 : i32
    %c0_i32_0 = arith.constant 0 : i32
    return %arg0, %c0_i32 : i32, i32
  }
  func.func @transform_1(%arg0: i32) -> (i32, i32) {
    %c0_i32 = arith.constant 0 : i32
    %c0_i32_0 = arith.constant 0 : i32
    %c0_i32_1 = arith.constant 0 : i32
    return %c0_i32, %c0_i32_0 : i32, i32
  }
  func.func @transform_2(%arg0: i32) -> (i32, i32) {
    %c0_i32 = arith.constant 0 : i32
    %c0_i32_0 = arith.constant 0 : i32
    %c0_i32_1 = arith.constant 0 : i32
    return %c0_i32, %c0_i32_0 : i32, i32
  }
  func.func @transform_3(%arg0: i32) -> (i32, i32) {
    %c0_i32 = arith.constant 0 : i32
    %c0_i32_0 = arith.constant 0 : i32
    %c0_i32_1 = arith.constant 0 : i32
    return %c0_i32, %c0_i32_0 : i32, i32
  }
  func.func @transform_4(%arg0: i32) -> (i32, i32) {
    %c0_i32 = arith.constant 0 : i32
    %c0_i32_0 = arith.constant 0 : i32
    %c0_i32_1 = arith.constant 0 : i32
    return %c0_i32, %c0_i32_0 : i32, i32
  }
  func.func @transform_5(%arg0: i32) -> (i32, i32) {
    %c0_i32 = arith.constant 0 : i32
    %c0_i32_0 = arith.constant 0 : i32
    %c0_i32_1 = arith.constant 0 : i32
    return %c0_i32, %c0_i32_0 : i32, i32
  }
  func.func @transform_6(%arg0: i32) -> (i32, i32) {
    %c0_i32 = arith.constant 0 : i32
    %c0_i32_0 = arith.constant 0 : i32
    %c0_i32_1 = arith.constant 0 : i32
    return %c0_i32, %c0_i32_0 : i32, i32
  }
  func.func @transform_7(%arg0: i32) -> (i32, i32) {
    %c0_i32 = arith.constant 0 : i32
    %c0_i32_0 = arith.constant 0 : i32
    return %arg0, %c0_i32 : i32, i32
  }
}

module attributes {stable_mosaic.version = 11 : i64} {
  func.func @_conv_pool_kernel(%arg0: i32, %arg1: memref<32x256xbf16, #tpu.memory_space<vmem>>, %arg2: memref<4x256x128xbf16, #tpu.memory_space<vmem>>, %arg3: memref<32x128xf32, #tpu.memory_space<vmem>>) attributes {dimension_semantics = [#tpu.dimension_semantics<parallel>], iteration_bounds = array<i64: 1>, scalar_prefetch = 0 : i64, scratch_operands = 0 : i64, tpu.core_type = #tpu.core_type<tc>, window_params = [{transform_indices = @transform_0, window_bounds = array<i64: 32, 256>}, {pipeline_mode = #tpu.pipeline_mode<synchronous>, transform_indices = @transform_1, window_bounds = array<i64: 4, 256, 128>}, {transform_indices = @transform_2, window_bounds = array<i64: 32, 128>}]} {
    %c0 = arith.constant 0 : index
    %c0_0 = arith.constant 0 : index
    %0 = vector.load %arg1[%c0, %c0_0] : memref<32x256xbf16, #tpu.memory_space<vmem>>, vector<32x256xbf16>
    %c0_1 = arith.constant 0 : index
    %c0_2 = arith.constant 0 : index
    %c0_3 = arith.constant 0 : index
    %1 = vector.load %arg2[%c0_1, %c0_2, %c0_3] : memref<4x256x128xbf16, #tpu.memory_space<vmem>>, vector<1x256x128xbf16>
    %2 = vector.shape_cast %1 : vector<1x256x128xbf16> to vector<256x128xbf16>
    %cst = arith.constant dense<0.000000e+00> : vector<32x128xf32>
    %3 = tpu.matmul %0, %2, %cst {dimension_numbers = #tpu.dot_dimension_numbers<[1], [0], [0], [1], [0, 0, 1, 1], [], []>} : vector<32x256xbf16>, vector<256x128xbf16>, vector<32x128xf32> -> vector<32x128xf32>
    %c1 = arith.constant 1 : index
    %c0_4 = arith.constant 0 : index
    %c0_5 = arith.constant 0 : index
    %4 = vector.load %arg2[%c1, %c0_4, %c0_5] : memref<4x256x128xbf16, #tpu.memory_space<vmem>>, vector<1x256x128xbf16>
    %5 = vector.shape_cast %4 : vector<1x256x128xbf16> to vector<256x128xbf16>
    %cst_6 = arith.constant dense<0.000000e+00> : vector<32x128xf32>
    %6 = tpu.matmul %0, %5, %cst_6 {dimension_numbers = #tpu.dot_dimension_numbers<[1], [0], [0], [1], [0, 0, 1, 1], [], []>} : vector<32x256xbf16>, vector<256x128xbf16>, vector<32x128xf32> -> vector<32x128xf32>
    %7 = arith.maximumf %3, %6 : vector<32x128xf32>
    %c2 = arith.constant 2 : index
    %c0_7 = arith.constant 0 : index
    %c0_8 = arith.constant 0 : index
    %8 = vector.load %arg2[%c2, %c0_7, %c0_8] : memref<4x256x128xbf16, #tpu.memory_space<vmem>>, vector<1x256x128xbf16>
    %9 = vector.shape_cast %8 : vector<1x256x128xbf16> to vector<256x128xbf16>
    %cst_9 = arith.constant dense<0.000000e+00> : vector<32x128xf32>
    %10 = tpu.matmul %0, %9, %cst_9 {dimension_numbers = #tpu.dot_dimension_numbers<[1], [0], [0], [1], [0, 0, 1, 1], [], []>} : vector<32x256xbf16>, vector<256x128xbf16>, vector<32x128xf32> -> vector<32x128xf32>
    %11 = arith.maximumf %7, %10 : vector<32x128xf32>
    %c3 = arith.constant 3 : index
    %c0_10 = arith.constant 0 : index
    %c0_11 = arith.constant 0 : index
    %12 = vector.load %arg2[%c3, %c0_10, %c0_11] : memref<4x256x128xbf16, #tpu.memory_space<vmem>>, vector<1x256x128xbf16>
    %13 = vector.shape_cast %12 : vector<1x256x128xbf16> to vector<256x128xbf16>
    %cst_12 = arith.constant dense<0.000000e+00> : vector<32x128xf32>
    %14 = tpu.matmul %0, %13, %cst_12 {dimension_numbers = #tpu.dot_dimension_numbers<[1], [0], [0], [1], [0, 0, 1, 1], [], []>} : vector<32x256xbf16>, vector<256x128xbf16>, vector<32x128xf32> -> vector<32x128xf32>
    %15 = arith.maximumf %11, %14 : vector<32x128xf32>
    %cst_13 = arith.constant 0.000000e+00 : f32
    %16 = vector.broadcast %cst_13 : f32 to vector<32x128xf32>
    %17 = arith.maximumf %15, %16 : vector<32x128xf32>
    %c0_14 = arith.constant 0 : index
    %c0_15 = arith.constant 0 : index
    %18 = vector.load %arg3[%c0_14, %c0_15] : memref<32x128xf32, #tpu.memory_space<vmem>>, vector<32x128xf32>
    tpu.vector_store %arg3[%c0_14, %c0_15], %17 {strides = array<i32>} : memref<32x128xf32, #tpu.memory_space<vmem>>, vector<32x128xf32>,
    return
  }
  func.func @transform_0(%arg0: i32) -> (i32, i32) {
    %c0_i32 = arith.constant 0 : i32
    %c0_i32_0 = arith.constant 0 : i32
    return %arg0, %c0_i32 : i32, i32
  }
  func.func @transform_1(%arg0: i32) -> (i32, i32, i32) {
    %c0_i32 = arith.constant 0 : i32
    %c0_i32_0 = arith.constant 0 : i32
    %c0_i32_1 = arith.constant 0 : i32
    %c0_i32_2 = arith.constant 0 : i32
    return %c0_i32, %c0_i32_0, %c0_i32_1 : i32, i32, i32
  }
  func.func @transform_2(%arg0: i32) -> (i32, i32) {
    %c0_i32 = arith.constant 0 : i32
    %c0_i32_0 = arith.constant 0 : i32
    return %arg0, %c0_i32 : i32, i32
  }
}

</mosaic_0001>

<bundles_post_ra>
// kernel: lenet5_forward.3
= control target key start
LH: loop header
LB: loop body
LE: loop exit
PB: predicated region body
PF: predicated region fallthrough
CT: control target
= control target key end

     0   :  { %s2406_s1 = inlined_call_operand.vmem [shape: bf16[4,128,128], index: 1, kind: input, shape index: {}]   ;;  %s2407_s0 = inlined_call_operand.vmem [shape: bf16[288,128], index: 0, kind: input, shape index: {}]   ;;  %s2408_s2 = inlined_call_operand.vmem [shape: f32[288,128], index: 2, kind: output, shape index: {}]  }
   0x1   :  { %v1717_v0 = vld [vmem:[%s2406_s1] sm:$0xff]   ;;  %v1719_v2 = vld [vmem:[%s2406_s1 + $0x8] sm:$0xff]   ;;  %v1721_v4 = vld [vmem:[%s2406_s1 + $0x10] sm:$0xff]  }
   0x2   :  { %v1718_v1 = vld [vmem:[%s2406_s1 + $0x40] sm:$0xff]   ;;  %1509 = vmatprep.subr.bf16.mxu0 %v1717_v0  ;;  %v1720_v3 = vld [vmem:[%s2406_s1 + $0x48] sm:$0xff]   ;;  %v1722_v5 = vld [vmem:[%s2406_s1 + $0x50] sm:$0xff]  }
   0x3   :  { %1561 = vmatprep.subr.bf16.mxu1 %v1718_v1  ;;  %1510 = vmatpush3.bf16.msra.mxu0 %v1717_v0  ;;  %v1723_v6 = vld [vmem:[%s2406_s1 + $0x18] sm:$0xff]   ;;  %v1725_v8 = vld [vmem:[%s2406_s1 + $0x20] sm:$0xff]   ;;  %v1727_v10 = vld [vmem:[%s2406_s1 + $0x28] sm:$0xff]  }
   0x4   :  { %1562 = vmatpush3.bf16.msra.mxu1 %v1718_v1  ;;  %1511 = vmatprep.subr.bf16.mxu0 %v1719_v2  ;;  %v1724_v7 = vld [vmem:[%s2406_s1 + $0x58] sm:$0xff]   ;;  %v1726_v9 = vld [vmem:[%s2406_s1 + $0x60] sm:$0xff]   ;;  %v1728_v12 = vld [vmem:[%s2406_s1 + $0x68] sm:$0xff]  }
   0x5   :  { %1563 = vmatprep.subr.bf16.mxu1 %v1720_v3  ;;  %v1818_v11 = vld [vmem:[%s2407_s0] sm:$0xff]   ;;  %v1729_v13 = vld [vmem:[%s2406_s1 + $0x30] sm:$0xff]   ;;  %v1731_v15 = vld [vmem:[%s2406_s1 + $0x38] sm:$0xff]  }
   0x6   :  { %1525 = vmatprep.mubr.bf16.mxu0 %v1818_v11  ;;  %1577 = vmatprep.mubr.bf16.mxu1 %v1818_v11  ;;  %v1730_v14 = vld [vmem:[%s2406_s1 + $0x70] sm:$0xff]   ;;  %v1732_v16 = vld [vmem:[%s2406_s1 + $0x78] sm:$0xff]   ;;  %v1735_v17 = vld [vmem:[%s2406_s1 + $0x80] sm:$0xff]  }
   0x7   :  { %1512 = vmatpush3.bf16.msra.mxu0 %v1719_v2  ;;  %v1736_v18 = vld [vmem:[%s2406_s1 + $0xc0] sm:$0xff]   ;;  %v1846_v19 = vld [vmem:[%s2407_s0 + $0x8] sm:$0xff]   ;;  %v1851_v20 = vld [vmem:[%s2407_s0 + $0x10] sm:$0xff]  }
   0x8   :  { %1564 = vmatpush3.bf16.msra.mxu1 %v1720_v3  ;;  %1513 = vmatprep.subr.bf16.mxu0 %v1721_v4  ;;  %v1739_v21 = vld [vmem:[%s2406_s1 + $0x88] sm:$0xff]   ;;  %v1743_v23 = vld [vmem:[%s2406_s1 + $0x90] sm:$0xff]   ;;  %v1872_v25 = vld [vmem:[%s2407_s0 + $0x18] sm:$0xff]  }
   0x9   :  { %1565 = vmatprep.subr.bf16.mxu1 %v1722_v5  ;;  %v1740_v22 = vld [vmem:[%s2406_s1 + $0xc8] sm:$0xff]   ;;  %v1744_v24 = vld [vmem:[%s2406_s1 + $0xd0] sm:$0xff]   ;;  %v1877_v26 = vld [vmem:[%s2407_s0 + $0x20] sm:$0xff]  }
   0xa   :  { %v1747_v27 = vld [vmem:[%s2406_s1 + $0x98] sm:$0xff]   ;;  %v1892_v29 = vld [vmem:[%s2407_s0 + $0x28] sm:$0xff]   ;;  %v1751_v30 = vld [vmem:[%s2406_s1 + $0xa0] sm:$0xff]  }
   0xb   :  { %1514 = vmatpush3.bf16.msra.mxu0 %v1721_v4  ;;  %v1748_v28 = vld [vmem:[%s2406_s1 + $0xd8] sm:$0xff]   ;;  %v1752_v31 = vld [vmem:[%s2406_s1 + $0xe0] sm:$0xff]   ;;  %v1903_v32 = vld [vmem:[%s2407_s0 + $0x30] sm:$0xff]  }
   0xc   :  { %1566 = vmatpush3.bf16.msra.mxu1 %v1722_v5  ;;  %1515 = vmatprep.subr.bf16.mxu0 %v1723_v6  ;;  %v1755_v33 = vld [vmem:[%s2406_s1 + $0xa8] sm:$0xff]   ;;  %v1759_v35 = vld [vmem:[%s2406_s1 + $0xb0] sm:$0xff]   ;;  %v1746_v36 = vld [vmem:[%s2407_s0 + $0x38] sm:$0xff]  }
   0xd   :  { %1567 = vmatprep.subr.bf16.mxu1 %v1724_v7  ;;  %v1757_v34 = vld [vmem:[%s2406_s1 + $0xe8] sm:$0xff]   ;;  %v1762_v37 = vld [vmem:[%s2406_s1 + $0xf0] sm:$0xff]   ;;  %v1749_v38 = vld [vmem:[%s2407_s0 + $0x40] sm:$0xff]  }
   0xe   :  { %v1764_v39 = vld [vmem:[%s2406_s1 + $0xb8] sm:$0xff]   ;;  %v1750_v41 = vld [vmem:[%s2407_s0 + $0x48] sm:$0xff]   ;;  %v1753_v42 = vld [vmem:[%s2407_s0 + $0x50] sm:$0xff]  }
   0xf   :  { %1516 = vmatpush3.bf16.msra.mxu0 %v1723_v6  ;;  %v1766_v40 = vld [vmem:[%s2406_s1 + $0xf8] sm:$0xff]   ;;  %v1756_v44 = vld [vmem:[%s2407_s0 + $0x60] sm:$0xff]   ;;  %v1758_v45 = vld [vmem:[%s2407_s0 + $0x68] sm:$0xff]  }
  0x10   :  { %1568 = vmatpush3.bf16.msra.mxu1 %v1724_v7  ;;  %1517 = vmatprep.subr.bf16.mxu0 %v1725_v8  ;;  %v1754_v43 = vld [vmem:[%s2407_s0 + $0x58] sm:$0xff]   ;;  %v1760_v46 = vld [vmem:[%s2407_s0 + $0x70] sm:$0xff]   ;;  %v1763_v48 = vld [vmem:[%s2407_s0 + $0x80] sm:$0xff]  }
  0x11   :  { %1569 = vmatprep.subr.bf16.mxu1 %v1726_v9  ;;  %v1761_v47 = vld [vmem:[%s2407_s0 + $0x78] sm:$0xff]   ;;  %v1765_v49 = vld [vmem:[%s2407_s0 + $0x88] sm:$0xff]  }
  0x13   :  { %1518 = vmatpush3.bf16.msra.mxu0 %v1725_v8 }
  0x14   :  { %1570 = vmatpush3.bf16.msra.mxu1 %v1726_v9  ;;  %1519 = vmatprep.subr.bf16.mxu0 %v1727_v10 }
  0x15   :  { %1571 = vmatprep.subr.bf16.mxu1 %v1728_v12 }
  0x17   :  { %1520 = vmatpush3.bf16.msra.mxu0 %v1727_v10 }
  0x18   :  { %1572 = vmatpush3.bf16.msra.mxu1 %v1728_v12  ;;  %1521 = vmatprep.subr.bf16.mxu0 %v1729_v13 }
  0x19   :  { %1573 = vmatprep.subr.bf16.mxu1 %v1730_v14 }
  0x1b   :  { %1522 = vmatpush3.bf16.msra.mxu0 %v1729_v13 }
  0x1c   :  { %1574 = vmatpush3.bf16.msra.mxu1 %v1730_v14  ;;  %1523 = vmatprep.subr.bf16.mxu0 %v1731_v15 }
  0x1d   :  { %1575 = vmatprep.subr.bf16.mxu1 %v1732_v16 }
  0x1f   :  { %1524 = vmatpush3.bf16.msra.mxu0 %v1731_v15 }
  0x20   :  { %1576 = vmatpush3.bf16.msra.mxu1 %v1732_v16  ;;  %1613 = vmatprep.subr.bf16.mxu0 %v1735_v17 }
  0x21   :  { %1665 = vmatprep.subr.bf16.mxu1 %v1736_v18 }
  0x22   :  { %1526 = vmatmul.mubr.bf16.vlgmr.msra.gmra.mrb[0].mxu0 %v1846_v19 }
  0x23   :  { %1578 = vmatmul.mubr.bf16.vlgmr.msra.gmra.mrb[0].mxu1 %v1846_v19  ;;  %1614 = vmatpush3.bf16.msra.mxu0 %v1735_v17 }
  0x24   :  { %1666 = vmatpush3.bf16.msra.mxu1 %v1736_v18  ;;  %1529 = vmatprep.mubr.bf16.mxu0 %v1851_v20 }
  0x25   :  { %1581 = vmatprep.mubr.bf16.mxu1 %v1851_v20  ;;  %1615 = vmatprep.subr.bf16.mxu0 %v1739_v21 }
  0x26   :  { %1667 = vmatprep.subr.bf16.mxu1 %v1740_v22 }
  0x27   :  { %1616 = vmatpush3.bf16.msra.mxu0 %v1739_v21 }
  0x28   :  { %1668 = vmatpush3.bf16.msra.mxu1 %v1740_v22  ;;  %1617 = vmatprep.subr.bf16.mxu0 %v1743_v23 }
  0x29   :  { %1669 = vmatprep.subr.bf16.mxu1 %v1744_v24 }
  0x2a   :  { %1530 = vmatmul.mubr.bf16.gmra.mrb[4].mxu0 %v1872_v25 }
  0x2b   :  { %1582 = vmatmul.mubr.bf16.gmra.mrb[4].mxu1 %v1872_v25  ;;  %1533 = vmatprep.mubr.bf16.mxu0 %v1877_v26 }
  0x2c   :  { %1585 = vmatprep.mubr.bf16.mxu1 %v1877_v26  ;;  %1618 = vmatpush3.bf16.msra.mxu0 %v1743_v23 }
  0x2d   :  { %1670 = vmatpush3.bf16.msra.mxu1 %v1744_v24  ;;  %1619 = vmatprep.subr.bf16.mxu0 %v1747_v27 }
  0x2e   :  { %1671 = vmatprep.subr.bf16.mxu1 %v1748_v28 }
  0x30   :  { %1620 = vmatpush3.bf16.msra.mxu0 %v1747_v27 }
  0x31   :  { %1672 = vmatpush3.bf16.msra.mxu1 %v1748_v28  ;;  %1621 = vmatprep.subr.bf16.mxu0 %v1751_v30 }
  0x32   :  { %1534 = vmatmul.mubr.bf16.gmra.mrb[8].mxu0 %v1892_v29  ;;  %1673 = vmatprep.subr.bf16.mxu1 %v1752_v31 }
  0x33   :  { %1586 = vmatmul.mubr.bf16.gmra.mrb[8].mxu1 %v1892_v29  ;;  %1537 = vmatprep.mubr.bf16.mxu0 %v1903_v32 }
  0x34   :  { %1589 = vmatprep.mubr.bf16.mxu1 %v1903_v32  ;;  %1622 = vmatpush3.bf16.msra.mxu0 %v1751_v30 }
  0x35   :  { %1674 = vmatpush3.bf16.msra.mxu1 %v1752_v31  ;;  %1623 = vmatprep.subr.bf16.mxu0 %v1755_v33 }
  0x36   :  { %1675 = vmatprep.subr.bf16.mxu1 %v1757_v34 }
  0x38   :  { %1624 = vmatpush3.bf16.msra.mxu0 %v1755_v33 }
  0x39   :  { %1676 = vmatpush3.bf16.msra.mxu1 %v1757_v34  ;;  %1625 = vmatprep.subr.bf16.mxu0 %v1759_v35 }
  0x3a   :  { %1538 = vmatmul.mubr.bf16.gmra.mrb[12].mxu0 %v1746_v36  ;;  %1677 = vmatprep.subr.bf16.mxu1 %v1762_v37 }
  0x3b   :  { %1590 = vmatmul.mubr.bf16.gmra.mrb[12].mxu1 %v1746_v36  ;;  %1541 = vmatprep.mubr.bf16.mxu0 %v1749_v38 }
  0x3c   :  { %1593 = vmatprep.mubr.bf16.mxu1 %v1749_v38  ;;  %1626 = vmatpush3.bf16.msra.mxu0 %v1759_v35 }
  0x3d   :  { %1678 = vmatpush3.bf16.msra.mxu1 %v1762_v37  ;;  %1627 = vmatprep.subr.bf16.mxu0 %v1764_v39 }
  0x3e   :  { %1679 = vmatprep.subr.bf16.mxu1 %v1766_v40 }
  0x40   :  { %1628 = vmatpush3.bf16.msra.mxu0 %v1764_v39 }
  0x41   :  { %1680 = vmatpush3.bf16.msra.mxu1 %v1766_v40 }
  0x42   :  { %1542 = vmatmul.mubr.bf16.gmra.mrb[16].mxu0 %v1750_v41 }
  0x43   :  { %1594 = vmatmul.mubr.bf16.gmra.mrb[16].mxu1 %v1750_v41  ;;  %1545 = vmatprep.mubr.bf16.mxu0 %v1753_v42 }
  0x44   :  { %1597 = vmatprep.mubr.bf16.mxu1 %v1753_v42 }
  0x4a   :  { %1546 = vmatmul.mubr.bf16.gmra.mrb[20].mxu0 %v1754_v43 }
  0x4b   :  { %1598 = vmatmul.mubr.bf16.gmra.mrb[20].mxu1 %v1754_v43  ;;  %1549 = vmatprep.mubr.bf16.mxu0 %v1756_v44 }
  0x4c   :  { %1601 = vmatprep.mubr.bf16.mxu1 %v1756_v44 }
  0x52   :  { %1550 = vmatmul.mubr.bf16.gmra.mrb[24].mxu0 %v1758_v45 }
  0x53   :  { %1602 = vmatmul.mubr.bf16.gmra.mrb[24].mxu1 %v1758_v45  ;;  %1553 = vmatprep.mubr.bf16.mxu0 %v1760_v46 }
  0x54   :  { %1605 = vmatprep.mubr.bf16.mxu1 %v1760_v46 }
  0x5a   :  { %1554 = vmatmul.mubr.bf16.gmra.mrb[28].mxu0 %v1761_v47 }
  0x5b   :  { %1606 = vmatmul.mubr.bf16.gmra.mrb[28].mxu1 %v1761_v47  ;;  %1557 = vmatprep.mubr.bf16.mxu0 %v1763_v48 }
  0x5c   :  { %1609 = vmatprep.mubr.bf16.mxu1 %v1763_v48 }
  0x62   :  { %1558 = vmatmul.mubr.bf16.gmra.mrb[32].mxu0 %v1765_v49 }
  0x63   :  { %1610 = vmatmul.mubr.bf16.gmra.mrb[32].mxu1 %v1765_v49  ;;  %1629 = vmatprep.mubr.bf16.mxu0 %v1818_v11 }
  0x64   :  { %1681 = vmatprep.mubr.bf16.mxu1 %v1818_v11 }
  0x6a   :  { %1630 = vmatmul.mubr.bf16.vlgmr.msra.gmra.mrb[36].mxu0 %v1846_v19 }
  0x6b   :  { %1682 = vmatmul.mubr.bf16.vlgmr.msra.gmra.mrb[36].mxu1 %v1846_v19  ;;  %1633 = vmatprep.mubr.bf16.mxu0 %v1851_v20 }
  0x6c   :  { %1685 = vmatprep.mubr.bf16.mxu1 %v1851_v20 }
  0x72   :  { %1634 = vmatmul.mubr.bf16.gmra.mrb[40].mxu0 %v1872_v25 }
  0x73   :  { %1686 = vmatmul.mubr.bf16.gmra.mrb[40].mxu1 %v1872_v25  ;;  %1637 = vmatprep.mubr.bf16.mxu0 %v1877_v26 }
  0x74   :  { %1689 = vmatprep.mubr.bf16.mxu1 %v1877_v26 }
  0x7a   :  { %1638 = vmatmul.mubr.bf16.gmra.mrb[44].mxu0 %v1892_v29 }
  0x7b   :  { %1690 = vmatmul.mubr.bf16.gmra.mrb[44].mxu1 %v1892_v29  ;;  %1641 = vmatprep.mubr.bf16.mxu0 %v1903_v32 }
  0x7c   :  { %1693 = vmatprep.mubr.bf16.mxu1 %v1903_v32 }
  0x82   :  { %1642 = vmatmul.mubr.bf16.gmra.mrb[48].mxu0 %v1746_v36 }
  0x83   :  { %1694 = vmatmul.mubr.bf16.gmra.mrb[48].mxu1 %v1746_v36  ;;  %1645 = vmatprep.mubr.bf16.mxu0 %v1749_v38 }
  0x84   :  { %1697 = vmatprep.mubr.bf16.mxu1 %v1749_v38 }
  0x8a   :  { %1646 = vmatmul.mubr.bf16.gmra.mrb[52].mxu0 %v1750_v41 }
  0x8b   :  { %1698 = vmatmul.mubr.bf16.gmra.mrb[52].mxu1 %v1750_v41  ;;  %1649 = vmatprep.mubr.bf16.mxu0 %v1753_v42 }
  0x8c   :  { %1701 = vmatprep.mubr.bf16.mxu1 %v1753_v42 }
  0x92   :  { %1650 = vmatmul.mubr.bf16.gmra.mrb[56].mxu0 %v1754_v43 }
  0x93   :  { %1702 = vmatmul.mubr.bf16.gmra.mrb[56].mxu1 %v1754_v43  ;;  %1653 = vmatprep.mubr.bf16.mxu0 %v1756_v44 }
  0x94   :  { %1705 = vmatprep.mubr.bf16.mxu1 %v1756_v44 }
  0x9a   :  { %1654 = vmatmul.mubr.bf16.gmra.mrb[60].mxu0 %v1758_v45 }
  0x9b   :  { %1706 = vmatmul.mubr.bf16.gmra.mrb[60].mxu1 %v1758_v45  ;;  %1657 = vmatprep.mubr.bf16.mxu0 %v1760_v46 }
  0x9c   :  { %1709 = vmatprep.mubr.bf16.mxu1 %v1760_v46 }
  0xa2   :  { %1658 = vmatmul.mubr.bf16.gmra.mrb[64].mxu0 %v1761_v47 }
  0xa3   :  { %1710 = vmatmul.mubr.bf16.gmra.mrb[64].mxu1 %v1761_v47  ;;  %1661 = vmatprep.mubr.bf16.mxu0 %v1763_v48 }
  0xa4   :  { %1713 = vmatprep.mubr.bf16.mxu1 %v1763_v48 }
  0xaa   :  { %1662 = vmatmul.mubr.bf16.gmra.mrb[68].mxu0 %v1765_v49 }
  0xab   :  { %1714 = vmatmul.mubr.bf16.gmra.mrb[68].mxu1 %v1765_v49 }
  0xf5   :  { %v1974_v50 = vpop.f32.mrb[0].mxu0 }
  0xf6   :  { %v1976_v51 = vpop.f32.mrb[0].mxu1  ;;  %v1978_v52 = vpop.f32.mrb[1].mxu0 }
  0xf7   :  { %v1982_v54 = vpop.f32.mrb[1].mxu1  ;;  %v1984_v55 = vpop.f32.mrb[2].mxu0 }
  0xf8   :  { %v1988_v57 = vpop.f32.mrb[2].mxu1  ;;  %v1990_v58 = vpop.f32.mrb[3].mxu0  ;;  %v2460_v1 = vmax.f32 %v1978_v52, %v1982_v54 }
  0xf9   :  { %v1994_v60 = vpop.f32.mrb[3].mxu1 }
  0xfd   :  { %v1998_v62 = vpop.f32.mrb[4].mxu0 }
  0xfe   :  { %v2000_v63 = vpop.f32.mrb[4].mxu1  ;;  %v2002_v0 = vpop.f32.mrb[5].mxu0 }
  0xff   :  { %v2006_v2 = vpop.f32.mrb[5].mxu1  ;;  %v2008_v3 = vpop.f32.mrb[6].mxu0 }
 0x100   :  { %v2012_v5 = vpop.f32.mrb[6].mxu1  ;;  %v2014_v6 = vpop.f32.mrb[7].mxu0 }
 0x101   :  { %v2018_v8 = vpop.f32.mrb[7].mxu1 }
 0x105   :  { %v2022_v10 = vpop.f32.mrb[8].mxu0 }
 0x106   :  { %v2024_v11 = vpop.f32.mrb[8].mxu1  ;;  %v2026_v12 = vpop.f32.mrb[9].mxu0 }
 0x107   :  { %v2030_v14 = vpop.f32.mrb[9].mxu1  ;;  %v2032_v15 = vpop.f32.mrb[10].mxu0 }
 0x108   :  { %v2036_v17 = vpop.f32.mrb[10].mxu1  ;;  %v2038_v18 = vpop.f32.mrb[11].mxu0 }
 0x109   :  { %v2042_v20 = vpop.f32.mrb[11].mxu1 }
 0x10d   :  { %v2046_v22 = vpop.f32.mrb[12].mxu0 }
 0x10e   :  { %v2048_v23 = vpop.f32.mrb[12].mxu1  ;;  %v2050_v24 = vpop.f32.mrb[13].mxu0 }
 0x10f   :  { %v2054_v26 = vpop.f32.mrb[13].mxu1  ;;  %v2056_v27 = vpop.f32.mrb[14].mxu0 }
 0x110   :  { %v2060_v29 = vpop.f32.mrb[14].mxu1  ;;  %v2062_v30 = vpop.f32.mrb[15].mxu0 }
 0x111   :  { %v2066_v32 = vpop.f32.mrb[15].mxu1 }
 0x115   :  { %v2070_v34 = vpop.f32.mrb[16].mxu0 }
 0x116   :  { %v2072_v35 = vpop.f32.mrb[16].mxu1  ;;  %v2074_v36 = vpop.f32.mrb[17].mxu0 }
 0x117   :  { %v2078_v38 = vpop.f32.mrb[17].mxu1  ;;  %v2080_v39 = vpop.f32.mrb[18].mxu0 }
 0x118   :  { %v2084_v41 = vpop.f32.mrb[18].mxu1  ;;  %v2086_v42 = vpop.f32.mrb[19].mxu0 }
 0x119   :  { %v2090_v44 = vpop.f32.mrb[19].mxu1 }
 0x11d   :  { %v2094_v46 = vpop.f32.mrb[20].mxu0 }
 0x11e   :  { %v2096_v47 = vpop.f32.mrb[20].mxu1  ;;  %v2098_v48 = vpop.f32.mrb[21].mxu0 }
 0x11f   :  { %v2102_v40 = vpop.f32.mrb[21].mxu1  ;;  %v2104_v37 = vpop.f32.mrb[22].mxu0 }
 0x120   :  { %v2108_v33 = vpop.f32.mrb[22].mxu1  ;;  %v2110_v31 = vpop.f32.mrb[23].mxu0 }
 0x121   :  { %v2114_v28 = vpop.f32.mrb[23].mxu1 }
 0x122   :  { %2434 = vst [vmem:[#allocation2_spill] sm:$0xff] %v2114_v28 }
 0x125   :  { %v2118_v49 = vpop.f32.mrb[24].mxu0 }
 0x126   :  { %2435 = vst [vmem:[#allocation3_spill] sm:$0xff] %v2118_v49  ;;  %v2120_v21 = vpop.f32.mrb[24].mxu1  ;;  %v2122_v19 = vpop.f32.mrb[25].mxu0 }
 0x127   :  { %2436 = vst [vmem:[#allocation4_spill] sm:$0xff] %v2120_v21  ;;  %2437 = vst [vmem:[#allocation5_spill] sm:$0xff] %v2122_v19  ;;  %v2126_v16 = vpop.f32.mrb[25].mxu1  ;;  %v2128_v13 = vpop.f32.mrb[26].mxu0 }
 0x128   :  { %2438 = vst [vmem:[#allocation6_spill] sm:$0xff] %v2126_v16  ;;  %2439 = vst [vmem:[#allocation7_spill] sm:$0xff] %v2128_v13  ;;  %v2132_v9 = vpop.f32.mrb[26].mxu1  ;;  %v2134_v7 = vpop.f32.mrb[27].mxu0 }
 0x129   :  { %2440 = vst [vmem:[#allocation8_spill] sm:$0xff] %v2132_v9  ;;  %2441 = vst [vmem:[#allocation9_spill] sm:$0xff] %v2134_v7  ;;  %v2138_v4 = vpop.f32.mrb[27].mxu1  ;;  %v2461_v7 = vmax.f32 %v1984_v55, %v1988_v57  ;;  %v2463_v57 = vmax.f32 %v1998_v62, %v2000_v63 }
 0x12a   :  { %2442 = vst [vmem:[#allocation10_spill] sm:$0xff] %v2138_v4 }
 0x12d   :  { %v2142_v43 = vpop.f32.mrb[28].mxu0 }
 0x12e   :  { %2443 = vst [vmem:[#allocation11_spill] sm:$0xff] %v2142_v43  ;;  %v2144_v61 = vpop.f32.mrb[28].mxu1  ;;  %v2146_v59 = vpop.f32.mrb[29].mxu0 }
 0x12f   :  { %2444 = vst [vmem:[#allocation12_spill] sm:$0xff] %v2144_v61  ;;  %2445 = vst [vmem:[#allocation13_spill] sm:$0xff] %v2146_v59  ;;  %v2150_v56 = vpop.f32.mrb[29].mxu1  ;;  %v2152_v53 = vpop.f32.mrb[30].mxu0 }
 0x130   :  { %2446 = vst [vmem:[#allocation14_spill] sm:$0xff] %v2150_v56  ;;  %2447 = vst [vmem:[#allocation15_spill] sm:$0xff] %v2152_v53  ;;  %v2156_v9 = vpop.f32.mrb[30].mxu1  ;;  %v2158_v13 = vpop.f32.mrb[31].mxu0 }
 0x131   :  { %2448 = vst [vmem:[#allocation16_spill] sm:$0xff] %v2156_v9  ;;  %2449 = vst [vmem:[#allocation17_spill] sm:$0xff] %v2158_v13  ;;  %v2162_v4 = vpop.f32.mrb[31].mxu1 }
 0x132   :  { %2450 = vst [vmem:[#allocation18_spill] sm:$0xff] %v2162_v4 }
 0x135   :  { %v2166_v45 = vpop.f32.mrb[32].mxu0 }
 0x136   :  { %2451 = vst [vmem:[#allocation19_spill] sm:$0xff] %v2166_v45  ;;  %v2168_v61 = vpop.f32.mrb[32].mxu1  ;;  %v2170_v43 = vpop.f32.mrb[33].mxu0 }
 0x137   :  { %2452 = vst [vmem:[#allocation20_spill] sm:$0xff] %v2168_v61  ;;  %2453 = vst [vmem:[#allocation21_spill] sm:$0xff] %v2170_v43  ;;  %v2174_v56 = vpop.f32.mrb[33].mxu1  ;;  %v2176_v59 = vpop.f32.mrb[34].mxu0  ;;  %v2459_v61 = vmax.f32 %v1974_v50, %v1976_v51  ;;  %v2462_v50 = vmax.f32 %v1990_v58, %v1994_v60 }
 0x138   :  { %2454 = vst [vmem:[#allocation22_spill] sm:$0xff] %v2174_v56  ;;  %2455 = vst [vmem:[#allocation23_spill] sm:$0xff] %v2176_v59  ;;  %v2180_v9 = vpop.f32.mrb[34].mxu1  ;;  %v2182_v53 = vpop.f32.mrb[35].mxu0 }
 0x139   :  { %2456 = vst [vmem:[#allocation24_spill] sm:$0xff] %v2180_v9  ;;  %2457 = vst [vmem:[#allocation25_spill] sm:$0xff] %v2182_v53  ;;  %v2186_v4 = vpop.f32.mrb[35].mxu1 }
 0x13a   :  { %2458 = vst [vmem:[#allocation26_spill] sm:$0xff] %v2186_v4 }
 0x13d   :  { %v1631_v25 = vpop.f32.mrb[36].mxu0 }
 0x13e   :  { %v919_v45 = vmax.f32 %v2459_v61, %v1631_v25  ;;  %v1683_v16 = vpop.f32.mrb[36].mxu1  ;;  %v774_v19 = vpop.f32.mrb[37].mxu0 }
 0x13f   :  { %v917_v56 = vmax.f32 %v2460_v1, %v774_v19  ;;  %v1052_v43 = vpop.f32.mrb[37].mxu1  ;;  %v1632_v21 = vpop.f32.mrb[38].mxu0 }
 0x140   :  { %v1197_v49 = vmax.f32 %v919_v45, %v1683_v16  ;;  %v920_v9 = vmax.f32 %v2461_v7, %v1632_v21  ;;  %v1684_v59 = vpop.f32.mrb[38].mxu1  ;;  %v777_v13 = vpop.f32.mrb[39].mxu0  ;;  %v2466_v21 = vmax.f32 %v2014_v6, %v2018_v8  ;;  %v2467_v6 = vmax.f32 %v2022_v10, %v2024_v11 }
 0x141   :  { %v1195_v4 = vmax.f32 %v917_v56, %v1052_v43  ;;  %v918_v51 = vmax.f32 %v2462_v50, %v777_v13  ;;  %v1055_v61 = vpop.f32.mrb[39].mxu1  ;;  %v2465_v13 = vmax.f32 %v2008_v3, %v2012_v5 }
 0x142   :  { %v1233_v25 = vmax.f32 %v1197_v49, 0.0  ;;  %v1198_v53 = vmax.f32 %v920_v9, %v1684_v59 }
 0x143   :  { %v1231_v28 = vmax.f32 %v1195_v4, 0.0  ;;  %v1196_v52 = vmax.f32 %v918_v51, %v1055_v61 }
 0x144   :  { %1269 = vst [vmem:[%s2408_s2 + $0x10] sm:$0xff] %v1233_v25  ;;  %v1234_v54 = vmax.f32 %v1198_v53, 0.0  ;;  %v2464_v53 = vmax.f32 %v2002_v0, %v2006_v2  ;;  %v2468_v25 = vmax.f32 %v2026_v12, %v2030_v14 }
 0x145   :  { %1267 = vst [vmem:[%s2408_s2] sm:$0xff] %v1231_v28  ;;  %v1232_v55 = vmax.f32 %v1196_v52, 0.0  ;;  %v1635_v56 = vpop.f32.mrb[40].mxu0 }
 0x146   :  { %1270 = vst [vmem:[%s2408_s2 + $0x18] sm:$0xff] %v1234_v54  ;;  %v923_v58 = vmax.f32 %v2463_v57, %v1635_v56  ;;  %v1687_v59 = vpop.f32.mrb[40].mxu1  ;;  %v790_v60 = vpop.f32.mrb[41].mxu0  ;;  %v2469_v57 = vmax.f32 %v2032_v15, %v2036_v17 }
 0x147   :  { %1268 = vst [vmem:[%s2408_s2 + $0x8] sm:$0xff] %v1232_v55  ;;  %v921_v1 = vmax.f32 %v2464_v53, %v790_v60  ;;  %v1068_v4 = vpop.f32.mrb[41].mxu1  ;;  %v1636_v7 = vpop.f32.mrb[42].mxu0  ;;  %v2470_v60 = vmax.f32 %v2038_v18, %v2042_v20  ;;  %v2471_v18 = vmax.f32 %v2046_v22, %v2048_v23 }
 0x148   :  { %v1201_v9 = vmax.f32 %v923_v58, %v1687_v59  ;;  %v924_v16 = vmax.f32 %v2465_v13, %v1636_v7  ;;  %v1688_v19 = vpop.f32.mrb[42].mxu1  ;;  %v793_v62 = vpop.f32.mrb[43].mxu0 }
 0x149   :  { %v1199_v63 = vmax.f32 %v921_v1, %v1068_v4  ;;  %v922_v28 = vmax.f32 %v2466_v21, %v793_v62  ;;  %v1071_v43 = vpop.f32.mrb[43].mxu1 }
 0x14a   :  { %v1237_v45 = vmax.f32 %v1201_v9, 0.0  ;;  %v1202_v49 = vmax.f32 %v924_v16, %v1688_v19  ;;  %v2472_v19 = vmax.f32 %v2050_v24, %v2054_v26 }
 0x14b   :  { %v1235_v50 = vmax.f32 %v1199_v63, 0.0  ;;  %v1200_v0 = vmax.f32 %v922_v28, %v1071_v43  ;;  %v2473_v43 = vmax.f32 %v2056_v27, %v2060_v29 }
 0x14c   :  { %1273 = vst [vmem:[%s2408_s2 + $0x30] sm:$0xff] %v1237_v45  ;;  %v1238_v2 = vmax.f32 %v1202_v49, 0.0 }
 0x14d   :  { %1271 = vst [vmem:[%s2408_s2 + $0x20] sm:$0xff] %v1235_v50  ;;  %v1236_v3 = vmax.f32 %v1200_v0, 0.0  ;;  %v1639_v5 = vpop.f32.mrb[44].mxu0  ;;  %v2474_v50 = vmax.f32 %v2062_v30, %v2066_v32  ;;  %v2475_v30 = vmax.f32 %v2070_v34, %v2072_v35 }
 0x14e   :  { %1274 = vst [vmem:[%s2408_s2 + $0x38] sm:$0xff] %v1238_v2  ;;  %v927_v8 = vmax.f32 %v2467_v6, %v1639_v5  ;;  %v1691_v51 = vpop.f32.mrb[44].mxu1  ;;  %v806_v61 = vpop.f32.mrb[45].mxu0 }
 0x14f   :  { %1272 = vst [vmem:[%s2408_s2 + $0x28] sm:$0xff] %v1236_v3  ;;  %v925_v52 = vmax.f32 %v2468_v25, %v806_v61  ;;  %v1084_v54 = vpop.f32.mrb[45].mxu1  ;;  %v1640_v55 = vpop.f32.mrb[46].mxu0  ;;  %v2476_v61 = vmax.f32 %v2074_v36, %v2078_v38 }
 0x150   :  { %v1205_v56 = vmax.f32 %v927_v8, %v1691_v51  ;;  %v928_v58 = vmax.f32 %v2469_v57, %v1640_v55  ;;  %v1692_v59 = vpop.f32.mrb[46].mxu1  ;;  %v809_v10 = vpop.f32.mrb[47].mxu0 }
 0x151   :  { %v1203_v11 = vmax.f32 %v925_v52, %v1084_v54  ;;  %v926_v53 = vmax.f32 %v2470_v60, %v809_v10  ;;  %v1087_v1 = vpop.f32.mrb[47].mxu1 }
 0x152   :  { %v1241_v4 = vmax.f32 %v1205_v56, 0.0  ;;  %v1206_v7 = vmax.f32 %v928_v58, %v1692_v59  ;;  %v2477_v56 = vmax.f32 %v2080_v39, %v2084_v41  ;;  %v2478_v59 = vmax.f32 %v2086_v42, %v2090_v44 }
 0x153   :  { %v1239_v9 = vmax.f32 %v1203_v11, 0.0  ;;  %v1204_v12 = vmax.f32 %v926_v53, %v1087_v1  ;;  %v2479_v42 = vmax.f32 %v2094_v46, %v2096_v47 }
 0x154   :  { %1277 = vst [vmem:[%s2408_s2 + $0x50] sm:$0xff] %v1241_v4  ;;  %v1242_v14 = vmax.f32 %v1206_v7, 0.0 }
 0x155   :  { %1275 = vst [vmem:[%s2408_s2 + $0x40] sm:$0xff] %v1239_v9  ;;  %v1240_v15 = vmax.f32 %v1204_v12, 0.0  ;;  %v1643_v17 = vpop.f32.mrb[48].mxu0  ;;  %v2480_v9 = vmax.f32 %v2098_v48, %v2102_v40 }
 0x156   :  { %1278 = vst [vmem:[%s2408_s2 + $0x58] sm:$0xff] %v1242_v14  ;;  %v931_v20 = vmax.f32 %v2471_v18, %v1643_v17  ;;  %v1695_v13 = vpop.f32.mrb[48].mxu1  ;;  %v822_v16 = vpop.f32.mrb[49].mxu0  ;;  %v2481_v18 = vmax.f32 %v2104_v37, %v2108_v33 }
 0x157   :  { %1276 = vst [vmem:[%s2408_s2 + $0x48] sm:$0xff] %v1240_v15  ;;  %v929_v62 = vmax.f32 %v2472_v19, %v822_v16  ;;  %v1100_v63 = vpop.f32.mrb[49].mxu1  ;;  %v1644_v21 = vpop.f32.mrb[50].mxu0  ;;  %v2482_v16 = vld [vmem:[#allocation2_spill] sm:$0xff] }
 0x158   :  { %v1209_v28 = vmax.f32 %v931_v20, %v1695_v13  ;;  %v932_v45 = vmax.f32 %v2473_v43, %v1644_v21  ;;  %v1696_v49 = vpop.f32.mrb[50].mxu1  ;;  %v825_v22 = vpop.f32.mrb[51].mxu0  ;;  %v2483_v19 = vmax.f32 %v2110_v31, %v2482_v16  ;;  %v2484_v31 = vld [vmem:[#allocation3_spill] sm:$0xff]  ;;  %v2506_v16 = vld [vmem:[#allocation18_spill] sm:$0xff] }
 0x159   :  { %v1207_v23 = vmax.f32 %v929_v62, %v1100_v63  ;;  %v930_v0 = vmax.f32 %v2474_v50, %v825_v22  ;;  %v1103_v2 = vpop.f32.mrb[51].mxu1 }
 0x15a   :  { %v1245_v3 = vmax.f32 %v1209_v28, 0.0  ;;  %v1210_v5 = vmax.f32 %v932_v45, %v1696_v49  ;;  %v2485_v45 = vld [vmem:[#allocation4_spill] sm:$0xff] }
 0x15b   :  { %v1243_v6 = vmax.f32 %v1207_v23, 0.0  ;;  %v1208_v24 = vmax.f32 %v930_v0, %v1103_v2  ;;  %v2486_v49 = vmax.f32 %v2484_v31, %v2485_v45  ;;  %v2487_v0 = vld [vmem:[#allocation5_spill] sm:$0xff]  ;;  %v2488_v2 = vld [vmem:[#allocation6_spill] sm:$0xff]  ;;  %v2508_v31 = vld [vmem:[#allocation19_spill] sm:$0xff] }
 0x15c   :  { %1281 = vst [vmem:[%s2408_s2 + $0x70] sm:$0xff] %v1245_v3  ;;  %v1246_v26 = vmax.f32 %v1210_v5, 0.0  ;;  %v2489_v3 = vmax.f32 %v2487_v0, %v2488_v2  ;;  %v2509_v45 = vld [vmem:[#allocation20_spill] sm:$0xff]  ;;  %v2511_v0 = vld [vmem:[#allocation21_spill] sm:$0xff]  ;;  %v2512_v2 = vld [vmem:[#allocation22_spill] sm:$0xff] }
 0x15d   :  { %1279 = vst [vmem:[%s2408_s2 + $0x60] sm:$0xff] %v1243_v6  ;;  %v1244_v27 = vmax.f32 %v1208_v24, 0.0  ;;  %v1647_v29 = vpop.f32.mrb[52].mxu0 }
 0x15e   :  { %1282 = vst [vmem:[%s2408_s2 + $0x78] sm:$0xff] %v1246_v26  ;;  %v935_v32 = vmax.f32 %v2475_v30, %v1647_v29  ;;  %v1699_v8 = vpop.f32.mrb[52].mxu1  ;;  %v838_v51 = vpop.f32.mrb[53].mxu0  ;;  %v2491_v29 = vld [vmem:[#allocation8_spill] sm:$0xff] }
 0x15f   :  { %1280 = vst [vmem:[%s2408_s2 + $0x68] sm:$0xff] %v1244_v27  ;;  %v933_v25 = vmax.f32 %v2476_v61, %v838_v51  ;;  %v1116_v52 = vpop.f32.mrb[53].mxu1  ;;  %v1648_v54 = vpop.f32.mrb[54].mxu0  ;;  %v2490_v27 = vld [vmem:[#allocation7_spill] sm:$0xff] }
 0x160   :  { %v1213_v55 = vmax.f32 %v935_v32, %v1699_v8  ;;  %v936_v57 = vmax.f32 %v2477_v56, %v1648_v54  ;;  %v1700_v58 = vpop.f32.mrb[54].mxu1  ;;  %v841_v34 = vpop.f32.mrb[55].mxu0  ;;  %v2492_v30 = vmax.f32 %v2490_v27, %v2491_v29  ;;  %v2514_v27 = vld [vmem:[#allocation23_spill] sm:$0xff]  ;;  %v2515_v29 = vld [vmem:[#allocation24_spill] sm:$0xff] }
 0x161   :  { %v1211_v35 = vmax.f32 %v933_v25, %v1116_v52  ;;  %v934_v10 = vmax.f32 %v2478_v59, %v841_v34  ;;  %v1119_v11 = vpop.f32.mrb[55].mxu1  ;;  %v2493_v25 = vld [vmem:[#allocation9_spill] sm:$0xff]  ;;  %v2494_v52 = vld [vmem:[#allocation10_spill] sm:$0xff] }
 0x162   :  { %v1249_v60 = vmax.f32 %v1213_v55, 0.0  ;;  %v1214_v53 = vmax.f32 %v936_v57, %v1700_v58  ;;  %v2495_v54 = vmax.f32 %v2493_v25, %v2494_v52  ;;  %v2517_v25 = vld [vmem:[#allocation25_spill] sm:$0xff]  ;;  %v2518_v52 = vld [vmem:[#allocation26_spill] sm:$0xff] }
 0x163   :  { %v1247_v1 = vmax.f32 %v1211_v35, 0.0  ;;  %v1212_v36 = vmax.f32 %v934_v10, %v1119_v11 }
 0x164   :  { %1285 = vst [vmem:[%s2408_s2 + $0x90] sm:$0xff] %v1249_v60  ;;  %v1250_v38 = vmax.f32 %v1214_v53, 0.0  ;;  %v2496_v60 = vld [vmem:[#allocation11_spill] sm:$0xff]  ;;  %v2497_v53 = vld [vmem:[#allocation12_spill] sm:$0xff] }
 0x165   :  { %1283 = vst [vmem:[%s2408_s2 + $0x80] sm:$0xff] %v1247_v1  ;;  %v1248_v39 = vmax.f32 %v1212_v36, 0.0  ;;  %v1651_v41 = vpop.f32.mrb[56].mxu0  ;;  %v2498_v1 = vmax.f32 %v2496_v60, %v2497_v53 }
 0x166   :  { %1286 = vst [vmem:[%s2408_s2 + $0x98] sm:$0xff] %v1250_v38  ;;  %v939_v44 = vmax.f32 %v2479_v42, %v1651_v41  ;;  %v1703_v4 = vpop.f32.mrb[56].mxu1  ;;  %v854_v7 = vpop.f32.mrb[57].mxu0  ;;  %v2499_v41 = vld [vmem:[#allocation13_spill] sm:$0xff]  ;;  %v2500_v42 = vld [vmem:[#allocation14_spill] sm:$0xff] }
 0x167   :  { %1284 = vst [vmem:[%s2408_s2 + $0x88] sm:$0xff] %v1248_v39  ;;  %v937_v12 = vmax.f32 %v2480_v9, %v854_v7  ;;  %v1132_v14 = vpop.f32.mrb[57].mxu1  ;;  %v1652_v15 = vpop.f32.mrb[58].mxu0 }
 0x168   :  { %v1217_v17 = vmax.f32 %v939_v44, %v1703_v4  ;;  %v940_v20 = vmax.f32 %v2481_v18, %v1652_v15  ;;  %v1704_v13 = vpop.f32.mrb[58].mxu1  ;;  %v857_v46 = vpop.f32.mrb[59].mxu0  ;;  %v2501_v44 = vmax.f32 %v2499_v41, %v2500_v42  ;;  %v2503_v15 = vld [vmem:[#allocation16_spill] sm:$0xff] }
 0x169   :  { %v1215_v47 = vmax.f32 %v937_v12, %v1132_v14  ;;  %v938_v62 = vmax.f32 %v2483_v19, %v857_v46  ;;  %v1135_v63 = vpop.f32.mrb[59].mxu1  ;;  %v2502_v14 = vld [vmem:[#allocation15_spill] sm:$0xff] }
 0x16a   :  { %v1253_v21 = vmax.f32 %v1217_v17, 0.0  ;;  %v1218_v28 = vmax.f32 %v940_v20, %v1704_v13  ;;  %v2504_v17 = vmax.f32 %v2502_v14, %v2503_v15 }
 0x16b   :  { %v1251_v43 = vmax.f32 %v1215_v47, 0.0  ;;  %v1216_v40 = vmax.f32 %v938_v62, %v1135_v63  ;;  %v2505_v47 = vld [vmem:[#allocation17_spill] sm:$0xff] }
 0x16c   :  { %1289 = vst [vmem:[%s2408_s2 + $0xb0] sm:$0xff] %v1253_v21  ;;  %v1254_v48 = vmax.f32 %v1218_v28, 0.0  ;;  %v2507_v19 = vmax.f32 %v2505_v47, %v2506_v16 }
 0x16d   :  { %1287 = vst [vmem:[%s2408_s2 + $0xa0] sm:$0xff] %v1251_v43  ;;  %v1252_v33 = vmax.f32 %v1216_v40, 0.0  ;;  %v1655_v37 = vpop.f32.mrb[60].mxu0 }
 0x16e   :  { %1290 = vst [vmem:[%s2408_s2 + $0xb8] sm:$0xff] %v1254_v48  ;;  %v943_v22 = vmax.f32 %v2486_v49, %v1655_v37  ;;  %v1707_v23 = vpop.f32.mrb[60].mxu1  ;;  %v870_v50 = vpop.f32.mrb[61].mxu0  ;;  %v2510_v49 = vmax.f32 %v2508_v31, %v2509_v45 }
 0x16f   :  { %1288 = vst [vmem:[%s2408_s2 + $0xa8] sm:$0xff] %v1252_v33  ;;  %v941_v5 = vmax.f32 %v2489_v3, %v870_v50  ;;  %v1148_v6 = vpop.f32.mrb[61].mxu1  ;;  %v1656_v24 = vpop.f32.mrb[62].mxu0  ;;  %v2513_v3 = vmax.f32 %v2511_v0, %v2512_v2 }
 0x170   :  { %v1221_v26 = vmax.f32 %v943_v22, %v1707_v23  ;;  %v944_v32 = vmax.f32 %v2492_v30, %v1656_v24  ;;  %v1708_v8 = vpop.f32.mrb[62].mxu1  ;;  %v873_v51 = vpop.f32.mrb[63].mxu0  ;;  %v2516_v30 = vmax.f32 %v2514_v27, %v2515_v29 }
 0x171   :  { %v1219_v61 = vmax.f32 %v941_v5, %v1148_v6  ;;  %v942_v55 = vmax.f32 %v2495_v54, %v873_v51  ;;  %v1151_v56 = vpop.f32.mrb[63].mxu1  ;;  %v2519_v54 = vmax.f32 %v2517_v25, %v2518_v52 }
 0x172   :  { %v1257_v57 = vmax.f32 %v1221_v26, 0.0  ;;  %v1222_v58 = vmax.f32 %v944_v32, %v1708_v8 }
 0x173   :  { %v1255_v34 = vmax.f32 %v1219_v61, 0.0  ;;  %v1220_v35 = vmax.f32 %v942_v55, %v1151_v56 }
 0x174   :  { %1293 = vst [vmem:[%s2408_s2 + $0xd0] sm:$0xff] %v1257_v57  ;;  %v1258_v59 = vmax.f32 %v1222_v58, 0.0 }
 0x175   :  { %1291 = vst [vmem:[%s2408_s2 + $0xc0] sm:$0xff] %v1255_v34  ;;  %v1256_v10 = vmax.f32 %v1220_v35, 0.0  ;;  %v1659_v11 = vpop.f32.mrb[64].mxu0 }
 0x176   :  { %1294 = vst [vmem:[%s2408_s2 + $0xd8] sm:$0xff] %v1258_v59  ;;  %v947_v36 = vmax.f32 %v2498_v1, %v1659_v11  ;;  %v1711_v38 = vpop.f32.mrb[64].mxu1  ;;  %v886_v39 = vpop.f32.mrb[65].mxu0 }
 0x177   :  { %1292 = vst [vmem:[%s2408_s2 + $0xc8] sm:$0xff] %v1256_v10  ;;  %v945_v4 = vmax.f32 %v2501_v44, %v886_v39  ;;  %v1164_v7 = vpop.f32.mrb[65].mxu1  ;;  %v1660_v9 = vpop.f32.mrb[66].mxu0 }
 0x178   :  { %v1225_v12 = vmax.f32 %v947_v36, %v1711_v38  ;;  %v948_v18 = vmax.f32 %v2504_v17, %v1660_v9  ;;  %v1712_v20 = vpop.f32.mrb[66].mxu1  ;;  %v889_v13 = vpop.f32.mrb[67].mxu0 }
 0x179   :  { %v1223_v46 = vmax.f32 %v945_v4, %v1164_v7  ;;  %v946_v62 = vmax.f32 %v2507_v19, %v889_v13  ;;  %v1167_v63 = vpop.f32.mrb[67].mxu1 }
 0x17a   :  { %v1261_v21 = vmax.f32 %v1225_v12, 0.0  ;;  %v1226_v28 = vmax.f32 %v948_v18, %v1712_v20 }
 0x17b   :  { %v1259_v43 = vmax.f32 %v1223_v46, 0.0  ;;  %v1224_v40 = vmax.f32 %v946_v62, %v1167_v63 }
 0x17c   :  { %1297 = vst [vmem:[%s2408_s2 + $0xf0] sm:$0xff] %v1261_v21  ;;  %v1262_v48 = vmax.f32 %v1226_v28, 0.0 }
 0x17d   :  { %1295 = vst [vmem:[%s2408_s2 + $0xe0] sm:$0xff] %v1259_v43  ;;  %v1260_v33 = vmax.f32 %v1224_v40, 0.0  ;;  %v1663_v37 = vpop.f32.mrb[68].mxu0 }
 0x17e   :  { %1298 = vst [vmem:[%s2408_s2 + $0xf8] sm:$0xff] %v1262_v48  ;;  %v951_v22 = vmax.f32 %v2510_v49, %v1663_v37  ;;  %v1715_v23 = vpop.f32.mrb[68].mxu1  ;;  %v902_v50 = vpop.f32.mrb[69].mxu0 }
 0x17f   :  { %1296 = vst [vmem:[%s2408_s2 + $0xe8] sm:$0xff] %v1260_v33  ;;  %v949_v5 = vmax.f32 %v2513_v3, %v902_v50  ;;  %v1180_v6 = vpop.f32.mrb[69].mxu1  ;;  %v1664_v24 = vpop.f32.mrb[70].mxu0 }
 0x180   :  { %v1229_v26 = vmax.f32 %v951_v22, %v1715_v23  ;;  %v952_v32 = vmax.f32 %v2516_v30, %v1664_v24  ;;  %v1716_v8 = vpop.f32.mrb[70].mxu1  ;;  %v905_v51 = vpop.f32.mrb[71].mxu0 }
 0x181   :  { %v1227_v61 = vmax.f32 %v949_v5, %v1180_v6  ;;  %v950_v55 = vmax.f32 %v2519_v54, %v905_v51  ;;  %v1183_v56 = vpop.f32.mrb[71].mxu1 }
 0x182   :  { %v1265_v57 = vmax.f32 %v1229_v26, 0.0  ;;  %v1230_v58 = vmax.f32 %v952_v32, %v1716_v8 }
 0x183   :  { %v1263_v34 = vmax.f32 %v1227_v61, 0.0  ;;  %v1228_v35 = vmax.f32 %v950_v55, %v1183_v56 }
 0x184   :  { %1301 = vst [vmem:[%s2408_s2 + $0x110] sm:$0xff] %v1265_v57  ;;  %v1266_v59 = vmax.f32 %v1230_v58, 0.0 }
 0x185   :  { %1299 = vst [vmem:[%s2408_s2 + $0x100] sm:$0xff] %v1263_v34  ;;  %v1264_v10 = vmax.f32 %v1228_v35, 0.0 }
 0x186   :  { %1302 = vst [vmem:[%s2408_s2 + $0x118] sm:$0xff] %v1266_v59 }
 0x187   :  { %1300 = vst [vmem:[%s2408_s2 + $0x108] sm:$0xff] %v1264_v10 }

// kernel: lenet5_forward.5
= control target key start
LH: loop header
LB: loop body
LE: loop exit
PB: predicated region body
PF: predicated region fallthrough
CT: control target
= control target key end

     0   :  { %v605_v1 = vmov 0.0   ;;  %vm606_vm0 = vmmov 0   ;;  %s782_s1 = inlined_call_operand.vmem [shape: bf16[256,128], index: 1, kind: input, shape index: {}]   ;;  %s783_s0 = inlined_call_operand.vmem [shape: bf16[16,256], index: 0, kind: input, shape index: {}]   ;;  %s784_s3 = inlined_call_operand.vmem [shape: bf16[128,128], index: 3, kind: input, shape index: {}]   ;;  %s785_s5 = inlined_call_operand.vmem [shape: bf16[128,128], index: 5, kind: input, shape index: {}]   ;;  %s786_s2 = inlined_call_operand.vmem [shape: f32[1,128], index: 2, kind: input, shape index: {}]   ;;  %s787_s4 = inlined_call_operand.vmem [shape: f32[1,128], index: 4, kind: input, shape index: {}]   ;;  %s788_s6 = inlined_call_operand.vmem [shape: f32[1,128], index: 6, kind: input, shape index: {}]   ;;  %s789_s7 = inlined_call_operand.vmem [shape: f32[16,128], index: 7, kind: output, shape index: {}]  }
   0x1   :  { %v570_v0 = vld [vmem:[%s782_s1 + $0x40] sm:$0xff]   ;;  %528 = vmatprep.subr.bf16.mxu1 %v605_v1  ;;  %v572_v3 = vld [vmem:[%s782_s1 + $0x48] sm:$0xff]   ;;  %v574_v5 = vld [vmem:[%s782_s1 + $0x50] sm:$0xff]   ;;  %544 = vmatprep.mubr.msk.bf16.mxu1 %vm606_vm0, %v605_v1 }
   0x2   :  { %v571_v2 = vld [vmem:[%s782_s1] sm:$0xff]   ;;  %488 = vmatprep.subr.bf16.mxu0 %v570_v0  ;;  %v573_v4 = vld [vmem:[%s782_s1 + $0x8] sm:$0xff]   ;;  %v575_v6 = vld [vmem:[%s782_s1 + $0x10] sm:$0xff]  }
   0x3   :  { %489 = vmatpush3.bf16.msra.mxu0 %v571_v2  ;;  %v576_v7 = vld [vmem:[%s782_s1 + $0x58] sm:$0xff]   ;;  %v578_v9 = vld [vmem:[%s782_s1 + $0x60] sm:$0xff]   ;;  %v580_v11 = vld [vmem:[%s782_s1 + $0x68] sm:$0xff]  }
   0x4   :  { %490 = vmatprep.subr.bf16.mxu0 %v572_v3  ;;  %v577_v8 = vld [vmem:[%s782_s1 + $0x18] sm:$0xff]   ;;  %v579_v10 = vld [vmem:[%s782_s1 + $0x20] sm:$0xff]   ;;  %v581_v12 = vld [vmem:[%s782_s1 + $0x28] sm:$0xff]  }
   0x5   :  { %v588_v13 = vld [vmem:[%s783_s0 + $0x4] ss:$8 sps:$4 sm:$0xff]   ;;  %v582_v15 = vld [vmem:[%s782_s1 + $0x70] sm:$0xff]   ;;  %v584_v18 = vld [vmem:[%s782_s1 + $0x78] sm:$0xff]  }
   0x6   :  { %v589_v14 = vld [vmem:[%s784_s3] sm:$0xff]   ;;  %206 = vmatprep.mubr.bf16.mxu0 %v588_v13  ;;  %v590_v16 = vld [vmem:[%s784_s3 + $0x8] sm:$0xff]   ;;  %v583_v17 = vld [vmem:[%s782_s1 + $0x30] sm:$0xff]  }
   0x7   :  { %491 = vmatpush3.bf16.msra.mxu0 %v573_v4  ;;  %529 = vmatpush3.bf16.msra.mxu1 %v589_v14  ;;  %v591_v19 = vld [vmem:[%s784_s3 + $0x10] sm:$0xff]   ;;  %v585_v20 = vld [vmem:[%s782_s1 + $0x38] sm:$0xff]   ;;  %v586_v22 = vld [vmem:[%s783_s0] ss:$8 sps:$4 sm:$0xff]  }
   0x8   :  { %492 = vmatprep.subr.bf16.mxu0 %v574_v5  ;;  %530 = vmatprep.subr.bf16.mxu1 %v605_v1  ;;  %v592_v21 = vld [vmem:[%s784_s3 + $0x18] sm:$0xff]   ;;  %v593_v23 = vld [vmem:[%s784_s3 + $0x20] sm:$0xff]   ;;  %v594_v24 = vld [vmem:[%s784_s3 + $0x28] sm:$0xff]  }
   0x9   :  { %v595_v25 = vld [vmem:[%s784_s3 + $0x30] sm:$0xff]   ;;  %v596_v26 = vld [vmem:[%s784_s3 + $0x38] sm:$0xff]   ;;  %v597_v27 = vld [vmem:[%s785_s5] sm:$0xff]  }
   0xa   :  { %v598_v28 = vld [vmem:[%s785_s5 + $0x8] sm:$0xff]   ;;  %v599_v29 = vld [vmem:[%s785_s5 + $0x10] sm:$0xff]   ;;  %v600_v30 = vld [vmem:[%s785_s5 + $0x18] sm:$0xff]  }
   0xb   :  { %493 = vmatpush3.bf16.msra.mxu0 %v575_v6  ;;  %531 = vmatpush3.bf16.msra.mxu1 %v590_v16  ;;  %v601_v31 = vld [vmem:[%s785_s5 + $0x20] sm:$0xff]   ;;  %v602_v32 = vld [vmem:[%s785_s5 + $0x28] sm:$0xff]   ;;  %v603_v45 = vld [vmem:[%s785_s5 + $0x30] sm:$0xff]  }
   0xc   :  { %494 = vmatprep.subr.bf16.mxu0 %v576_v7  ;;  %532 = vmatprep.subr.bf16.mxu1 %v605_v1  ;;  %v451_v34 = vld [vmem:[%s786_s2] ss:$0 sm:$0xff]  ;;  %v604_v46 = vld [vmem:[%s785_s5 + $0x38] sm:$0xff]  }
   0xd   :  { %v470_v47 = vld [vmem:[%s787_s4] ss:$0 sm:$0xff] }
   0xe   :  { %v479_v57 = vld [vmem:[%s788_s6] ss:$0 sm:$0xff] }
   0xf   :  { %495 = vmatpush3.bf16.msra.mxu0 %v577_v8  ;;  %533 = vmatpush3.bf16.msra.mxu1 %v591_v19 }
  0x10   :  { %496 = vmatprep.subr.bf16.mxu0 %v578_v9  ;;  %534 = vmatprep.subr.bf16.mxu1 %v605_v1 }
  0x13   :  { %497 = vmatpush3.bf16.msra.mxu0 %v579_v10  ;;  %535 = vmatpush3.bf16.msra.mxu1 %v592_v21 }
  0x14   :  { %498 = vmatprep.subr.bf16.mxu0 %v580_v11  ;;  %536 = vmatprep.subr.bf16.mxu1 %v605_v1 }
  0x17   :  { %499 = vmatpush3.bf16.msra.mxu0 %v581_v12  ;;  %537 = vmatpush3.bf16.msra.mxu1 %v593_v23 }
  0x18   :  { %500 = vmatprep.subr.bf16.mxu0 %v582_v15  ;;  %538 = vmatprep.subr.bf16.mxu1 %v605_v1 }
  0x1b   :  { %501 = vmatpush3.bf16.msra.mxu0 %v583_v17  ;;  %539 = vmatpush3.bf16.msra.mxu1 %v594_v24 }
  0x1c   :  { %502 = vmatprep.subr.bf16.mxu0 %v584_v18  ;;  %540 = vmatprep.subr.bf16.mxu1 %v605_v1 }
  0x1f   :  { %503 = vmatpush3.bf16.msra.mxu0 %v585_v20  ;;  %541 = vmatpush3.bf16.msra.mxu1 %v595_v25 }
  0x20   :  { %548 = vmatprep.subr.bf16.mxu0 %v605_v1  ;;  %542 = vmatprep.subr.bf16.mxu1 %v605_v1 }
  0x22   :  { %207 = vmatmul.mubr.bf16.vlgmr.msra.gmra.mrb[0].mxu0 %v586_v22 }
  0x23   :  { %543 = vmatpush3.bf16.msra.mxu1 %v596_v26  ;;  %564 = vmatprep.mubr.msk.bf16.mxu0 %vm606_vm0, %v605_v1 }
  0x24   :  { %549 = vmatpush3.bf16.msra.mxu0 %v597_v27 }
  0x25   :  { %550 = vmatprep.subr.bf16.mxu0 %v605_v1 }
  0x28   :  { %551 = vmatpush3.bf16.msra.mxu0 %v598_v28 }
  0x29   :  { %552 = vmatprep.subr.bf16.mxu0 %v605_v1 }
  0x2c   :  { %553 = vmatpush3.bf16.msra.mxu0 %v599_v29 }
  0x2d   :  { %554 = vmatprep.subr.bf16.mxu0 %v605_v1 }
  0x30   :  { %555 = vmatpush3.bf16.msra.mxu0 %v600_v30 }
  0x31   :  { %556 = vmatprep.subr.bf16.mxu0 %v605_v1 }
  0x34   :  { %557 = vmatpush3.bf16.msra.mxu0 %v601_v31 }
  0x35   :  { %558 = vmatprep.subr.bf16.mxu0 %v605_v1 }
  0x38   :  { %559 = vmatpush3.bf16.msra.mxu0 %v602_v32 }
  0x39   :  { %560 = vmatprep.subr.bf16.mxu0 %v605_v1 }
  0x3c   :  { %561 = vmatpush3.bf16.msra.mxu0 %v603_v45 }
  0x3d   :  { %562 = vmatprep.subr.bf16.mxu0 %v605_v1 }
  0x40   :  { %563 = vmatpush3.bf16.msra.mxu0 %v604_v46 }
  0xf5   :  { %v504_v33 = vpop.f32.mrb[0].mxu0 }
  0xf6   :  { %v505_v35 = vpop.f32.mrb[1].mxu0 }
  0xf7   :  { %v506_v36 = vadd.f32 %v505_v35, %v504_v33  ;;  %v507_v37 = vpop.f32.mrb[2].mxu0 }
  0xf8   :  { %v508_v38 = vpop.f32.mrb[3].mxu0 }
  0xf9   :  { %v209_v39 = vadd.f32 %v506_v36, %v451_v34  ;;  %v509_v40 = vadd.f32 %v508_v38, %v507_v37 }
  0xfb   :  { %v212_v41 = vadd.f32 %v509_v40, %v451_v34  ;;  %v215_v42 = vmax.f32 %v209_v39, 0.0 }
  0xfd   :  { %v216_v43 = vmax.f32 %v212_v41, 0.0 }
  0xff   :  { %v217_v44 = vpack.c.bf16 %v216_v43, %v215_v42 }
 0x101   :  { %545 = vmatmul.mubr.bf16.vlgmr.msra.gmra.mrb[0].mxu1 %v217_v44 }
 0x1d4   :  { %v323_v48 = vpop.f32.mrb[0].mxu1 }
 0x1d5   :  { %v324_v49 = vadd.f32 %v470_v47, %v323_v48  ;;  %v546_v50 = vpop.f32.mrb[1].mxu1 }
 0x1d6   :  { %v326_v51 = vpop.f32.mrb[2].mxu1 }
 0x1d7   :  { %v327_v52 = vadd.f32 %v470_v47, %v326_v51  ;;  %v547_v53 = vpop.f32.mrb[3].mxu1  ;;  %v330_v54 = vmax.f32 %v324_v49, 0.0 }
 0x1d9   :  { %v331_v55 = vmax.f32 %v327_v52, 0.0 }
 0x1db   :  { %v332_v56 = vpack.c.bf16 %v331_v55, %v330_v54 }
 0x1dd   :  { %565 = vmatmul.mubr.bf16.vlgmr.msra.gmra.mrb[4].mxu0 %v332_v56 }
 0x2b0   :  { %v438_v58 = vpop.f32.mrb[4].mxu0 }
 0x2b1   :  { %v439_v59 = vadd.f32 %v479_v57, %v438_v58  ;;  %v566_v60 = vpop.f32.mrb[5].mxu0 }
 0x2b2   :  { %v441_v61 = vpop.f32.mrb[6].mxu0 }
 0x2b3   :  { %445 = vst [vmem:[%s789_s7] sm:$0xff] %v439_v59  ;;  %v442_v62 = vadd.f32 %v479_v57, %v441_v61  ;;  %v567_v63 = vpop.f32.mrb[7].mxu0 }
 0x2b5   :  { %446 = vst [vmem:[%s789_s7 + $0x8] sm:$0xff] %v442_v62 }

// kernel: lenet5_forward.4
= control target key start
LH: loop header
LB: loop body
LE: loop exit
PB: predicated region body
PF: predicated region fallthrough
CT: control target
= control target key end

     0   :  { %s1360_s1 = inlined_call_operand.vmem [shape: bf16[4,256,128], index: 1, kind: input, shape index: {}]   ;;  %s1361_s0 = inlined_call_operand.vmem [shape: bf16[32,256], index: 0, kind: input, shape index: {}]   ;;  %s1362_s2 = inlined_call_operand.vmem [shape: f32[32,128], index: 2, kind: output, shape index: {}]  }
   0x1   :  { %v1047_v0 = vld [vmem:[%s1360_s1 + $0x40] sm:$0xff]   ;;  %v1051_v4 = vld [vmem:[%s1360_s1 + $0x48] sm:$0xff]   ;;  %v1055_v8 = vld [vmem:[%s1360_s1 + $0x50] sm:$0xff]  }
   0x2   :  { %v1048_v1 = vld [vmem:[%s1360_s1 + $0xc0] sm:$0xff]   ;;  %935 = vmatprep.subr.bf16.mxu0 %v1047_v0  ;;  %v1052_v5 = vld [vmem:[%s1360_s1 + $0xc8] sm:$0xff]   ;;  %v1056_v9 = vld [vmem:[%s1360_s1 + $0xd0] sm:$0xff]  }
   0x3   :  { %v1049_v2 = vld [vmem:[%s1360_s1] sm:$0xff]   ;;  %963 = vmatprep.subr.bf16.mxu1 %v1048_v1  ;;  %v1053_v6 = vld [vmem:[%s1360_s1 + $0x8] sm:$0xff]   ;;  %v1057_v10 = vld [vmem:[%s1360_s1 + $0x10] sm:$0xff]  }
   0x4   :  { %v1050_v3 = vld [vmem:[%s1360_s1 + $0x80] sm:$0xff]   ;;  %936 = vmatpush3.bf16.msra.mxu0 %v1049_v2  ;;  %v1054_v7 = vld [vmem:[%s1360_s1 + $0x88] sm:$0xff]   ;;  %v1058_v11 = vld [vmem:[%s1360_s1 + $0x90] sm:$0xff]  }
   0x5   :  { %964 = vmatpush3.bf16.msra.mxu1 %v1050_v3  ;;  %937 = vmatprep.subr.bf16.mxu0 %v1051_v4  ;;  %v1059_v12 = vld [vmem:[%s1360_s1 + $0x58] sm:$0xff]   ;;  %v1063_v16 = vld [vmem:[%s1360_s1 + $0x60] sm:$0xff]   ;;  %v1067_v20 = vld [vmem:[%s1360_s1 + $0x68] sm:$0xff]  }
   0x6   :  { %965 = vmatprep.subr.bf16.mxu1 %v1052_v5  ;;  %v1060_v13 = vld [vmem:[%s1360_s1 + $0xd8] sm:$0xff]   ;;  %v1064_v17 = vld [vmem:[%s1360_s1 + $0xe0] sm:$0xff]   ;;  %v1068_v21 = vld [vmem:[%s1360_s1 + $0xe8] sm:$0xff]  }
   0x7   :  { %v1061_v14 = vld [vmem:[%s1360_s1 + $0x18] sm:$0xff]   ;;  %v1065_v18 = vld [vmem:[%s1360_s1 + $0x20] sm:$0xff]   ;;  %v1069_v22 = vld [vmem:[%s1360_s1 + $0x28] sm:$0xff]  }
   0x8   :  { %938 = vmatpush3.bf16.msra.mxu0 %v1053_v6  ;;  %v1062_v15 = vld [vmem:[%s1360_s1 + $0x98] sm:$0xff]   ;;  %v1066_v19 = vld [vmem:[%s1360_s1 + $0xa0] sm:$0xff]   ;;  %v1070_v23 = vld [vmem:[%s1360_s1 + $0xa8] sm:$0xff]  }
   0x9   :  { %966 = vmatpush3.bf16.msra.mxu1 %v1054_v7  ;;  %939 = vmatprep.subr.bf16.mxu0 %v1055_v8  ;;  %v1071_v24 = vld [vmem:[%s1360_s1 + $0x70] sm:$0xff]   ;;  %v1075_v28 = vld [vmem:[%s1360_s1 + $0x78] sm:$0xff]   ;;  %v1231_v32 = vld [vmem:[%s1361_s0 + $0x4] ss:$8 sps:$4 sm:$0xff]  }
   0xa   :  { %967 = vmatprep.subr.bf16.mxu1 %v1056_v9  ;;  %v1072_v25 = vld [vmem:[%s1360_s1 + $0xf0] sm:$0xff]   ;;  %v1076_v29 = vld [vmem:[%s1360_s1 + $0xf8] sm:$0xff]   ;;  %v1236_v33 = vld [vmem:[%s1361_s0] ss:$8 sps:$4 sm:$0xff]   ;;  %196 = vmatprep.mubr.bf16.mxu0 %v1231_v32 }
   0xb   :  { %v1073_v26 = vld [vmem:[%s1360_s1 + $0x30] sm:$0xff]   ;;  %v1077_v30 = vld [vmem:[%s1360_s1 + $0x38] sm:$0xff]   ;;  %374 = vmatprep.mubr.bf16.mxu1 %v1231_v32  ;;  %v1082_v34 = vld [vmem:[%s1360_s1 + $0x140] sm:$0xff]  }
   0xc   :  { %940 = vmatpush3.bf16.msra.mxu0 %v1057_v10  ;;  %v1074_v27 = vld [vmem:[%s1360_s1 + $0xb0] sm:$0xff]   ;;  %v1078_v31 = vld [vmem:[%s1360_s1 + $0xb8] sm:$0xff]   ;;  %v1083_v35 = vld [vmem:[%s1360_s1 + $0x1c0] sm:$0xff]  }
   0xd   :  { %968 = vmatpush3.bf16.msra.mxu1 %v1058_v11  ;;  %941 = vmatprep.subr.bf16.mxu0 %v1059_v12  ;;  %v1084_v36 = vld [vmem:[%s1360_s1 + $0x100] sm:$0xff]   ;;  %v1086_v38 = vld [vmem:[%s1360_s1 + $0x148] sm:$0xff]   ;;  %v1090_v42 = vld [vmem:[%s1360_s1 + $0x150] sm:$0xff]  }
   0xe   :  { %969 = vmatprep.subr.bf16.mxu1 %v1060_v13  ;;  %v1085_v37 = vld [vmem:[%s1360_s1 + $0x180] sm:$0xff]   ;;  %v1087_v39 = vld [vmem:[%s1360_s1 + $0x1c8] sm:$0xff]   ;;  %v1091_v43 = vld [vmem:[%s1360_s1 + $0x1d0] sm:$0xff]  }
   0xf   :  { %v1088_v40 = vld [vmem:[%s1360_s1 + $0x108] sm:$0xff]   ;;  %v1092_v44 = vld [vmem:[%s1360_s1 + $0x110] sm:$0xff]   ;;  %v1094_v46 = vld [vmem:[%s1360_s1 + $0x158] sm:$0xff]  }
  0x10   :  { %942 = vmatpush3.bf16.msra.mxu0 %v1061_v14  ;;  %v1089_v41 = vld [vmem:[%s1360_s1 + $0x188] sm:$0xff]   ;;  %v1093_v45 = vld [vmem:[%s1360_s1 + $0x190] sm:$0xff]   ;;  %v1095_v47 = vld [vmem:[%s1360_s1 + $0x1d8] sm:$0xff]  }
  0x11   :  { %970 = vmatpush3.bf16.msra.mxu1 %v1062_v15  ;;  %943 = vmatprep.subr.bf16.mxu0 %v1063_v16  ;;  %v1096_v48 = vld [vmem:[%s1360_s1 + $0x118] sm:$0xff]   ;;  %v1098_v50 = vld [vmem:[%s1360_s1 + $0x160] sm:$0xff]   ;;  %v1104_v55 = vld [vmem:[%s1360_s1 + $0x168] sm:$0xff]  }
  0x12   :  { %971 = vmatprep.subr.bf16.mxu1 %v1064_v17  ;;  %v1097_v49 = vld [vmem:[%s1360_s1 + $0x198] sm:$0xff]   ;;  %v1099_v51 = vld [vmem:[%s1360_s1 + $0x1e0] sm:$0xff]   ;;  %v1105_v56 = vld [vmem:[%s1360_s1 + $0x1e8] sm:$0xff]  }
  0x13   :  { %v1100_v52 = vld [vmem:[%s1360_s1 + $0x120] sm:$0xff]   ;;  %v1102_v54 = vld [vmem:[%s1361_s0 + $0x14] ss:$8 sps:$4 sm:$0xff]   ;;  %v1106_v57 = vld [vmem:[%s1361_s0 + $0x10] ss:$8 sps:$4 sm:$0xff]  }
  0x14   :  { %944 = vmatpush3.bf16.msra.mxu0 %v1065_v18  ;;  %v1101_v53 = vld [vmem:[%s1360_s1 + $0x1a0] sm:$0xff]   ;;  %v1107_v58 = vld [vmem:[%s1360_s1 + $0x128] sm:$0xff]   ;;  %v1109_v60 = vld [vmem:[%s1360_s1 + $0x170] sm:$0xff]  }
  0x15   :  { %972 = vmatpush3.bf16.msra.mxu1 %v1066_v19  ;;  %945 = vmatprep.subr.bf16.mxu0 %v1067_v20  ;;  %v1108_v59 = vld [vmem:[%s1360_s1 + $0x1a8] sm:$0xff]   ;;  %v1110_v61 = vld [vmem:[%s1360_s1 + $0x1f0] sm:$0xff]   ;;  %v1113_v0 = vld [vmem:[%s1360_s1 + $0x178] sm:$0xff]  }
  0x16   :  { %973 = vmatprep.subr.bf16.mxu1 %v1068_v21  ;;  %v1111_v62 = vld [vmem:[%s1360_s1 + $0x130] sm:$0xff]   ;;  %v1114_v1 = vld [vmem:[%s1360_s1 + $0x1f8] sm:$0xff]  }
  0x17   :  { %v1112_v63 = vld [vmem:[%s1360_s1 + $0x1b0] sm:$0xff]   ;;  %v1115_v2 = vld [vmem:[%s1360_s1 + $0x138] sm:$0xff]  }
  0x18   :  { %946 = vmatpush3.bf16.msra.mxu0 %v1069_v22  ;;  %v1116_v3 = vld [vmem:[%s1360_s1 + $0x1b8] sm:$0xff]  }
  0x19   :  { %974 = vmatpush3.bf16.msra.mxu1 %v1070_v23  ;;  %947 = vmatprep.subr.bf16.mxu0 %v1071_v24 }
  0x1a   :  { %975 = vmatprep.subr.bf16.mxu1 %v1072_v25 }
  0x1c   :  { %948 = vmatpush3.bf16.msra.mxu0 %v1073_v26 }
  0x1d   :  { %976 = vmatpush3.bf16.msra.mxu1 %v1074_v27  ;;  %949 = vmatprep.subr.bf16.mxu0 %v1075_v28 }
  0x1e   :  { %977 = vmatprep.subr.bf16.mxu1 %v1076_v29 }
  0x20   :  { %950 = vmatpush3.bf16.msra.mxu0 %v1077_v30 }
  0x21   :  { %978 = vmatpush3.bf16.msra.mxu1 %v1078_v31  ;;  %991 = vmatprep.subr.bf16.mxu0 %v1082_v34 }
  0x22   :  { %1019 = vmatprep.subr.bf16.mxu1 %v1083_v35 }
  0x23   :  { %197 = vmatmul.mubr.bf16.vlgmr.msra.gmra.mrb[0].mxu0 %v1236_v33 }
  0x24   :  { %375 = vmatmul.mubr.bf16.vlgmr.msra.gmra.mrb[0].mxu1 %v1236_v33  ;;  %992 = vmatpush3.bf16.msra.mxu0 %v1084_v36 }
  0x25   :  { %1020 = vmatpush3.bf16.msra.mxu1 %v1085_v37  ;;  %993 = vmatprep.subr.bf16.mxu0 %v1086_v38 }
  0x26   :  { %1021 = vmatprep.subr.bf16.mxu1 %v1087_v39  ;;  %204 = vmatprep.mubr.bf16.mxu0 %v1102_v54 }
  0x27   :  { %382 = vmatprep.mubr.bf16.mxu1 %v1102_v54 }
  0x28   :  { %994 = vmatpush3.bf16.msra.mxu0 %v1088_v40 }
  0x29   :  { %1022 = vmatpush3.bf16.msra.mxu1 %v1089_v41  ;;  %995 = vmatprep.subr.bf16.mxu0 %v1090_v42 }
  0x2a   :  { %1023 = vmatprep.subr.bf16.mxu1 %v1091_v43 }
  0x2b   :  { %205 = vmatmul.mubr.bf16.gmra.mrb[4].mxu0 %v1106_v57 }
  0x2c   :  { %996 = vmatpush3.bf16.msra.mxu0 %v1092_v44  ;;  %383 = vmatmul.mubr.bf16.gmra.mrb[4].mxu1 %v1106_v57 }
  0x2d   :  { %1024 = vmatpush3.bf16.msra.mxu1 %v1093_v45  ;;  %997 = vmatprep.subr.bf16.mxu0 %v1094_v46 }
  0x2e   :  { %1025 = vmatprep.subr.bf16.mxu1 %v1095_v47  ;;  %556 = vmatprep.mubr.bf16.mxu0 %v1231_v32 }
  0x2f   :  { %738 = vmatprep.mubr.bf16.mxu1 %v1231_v32 }
  0x30   :  { %998 = vmatpush3.bf16.msra.mxu0 %v1096_v48 }
  0x31   :  { %1026 = vmatpush3.bf16.msra.mxu1 %v1097_v49  ;;  %999 = vmatprep.subr.bf16.mxu0 %v1098_v50 }
  0x32   :  { %1027 = vmatprep.subr.bf16.mxu1 %v1099_v51 }
  0x34   :  { %1000 = vmatpush3.bf16.msra.mxu0 %v1100_v52 }
  0x35   :  { %1028 = vmatpush3.bf16.msra.mxu1 %v1101_v53  ;;  %1001 = vmatprep.subr.bf16.mxu0 %v1104_v55 }
  0x36   :  { %1029 = vmatprep.subr.bf16.mxu1 %v1105_v56 }
  0x38   :  { %1002 = vmatpush3.bf16.msra.mxu0 %v1107_v58 }
  0x39   :  { %1030 = vmatpush3.bf16.msra.mxu1 %v1108_v59  ;;  %1003 = vmatprep.subr.bf16.mxu0 %v1109_v60 }
  0x3a   :  { %1031 = vmatprep.subr.bf16.mxu1 %v1110_v61 }
  0x3c   :  { %1004 = vmatpush3.bf16.msra.mxu0 %v1111_v62 }
  0x3d   :  { %1032 = vmatpush3.bf16.msra.mxu1 %v1112_v63  ;;  %1005 = vmatprep.subr.bf16.mxu0 %v1113_v0 }
  0x3e   :  { %1033 = vmatprep.subr.bf16.mxu1 %v1114_v1 }
  0x40   :  { %1006 = vmatpush3.bf16.msra.mxu0 %v1115_v2 }
  0x41   :  { %1034 = vmatpush3.bf16.msra.mxu1 %v1116_v3 }
  0x43   :  { %557 = vmatmul.mubr.bf16.vlgmr.msra.gmra.mrb[8].mxu0 %v1236_v33 }
  0x44   :  { %739 = vmatmul.mubr.bf16.vlgmr.msra.gmra.mrb[8].mxu1 %v1236_v33  ;;  %564 = vmatprep.mubr.bf16.mxu0 %v1102_v54 }
  0x45   :  { %746 = vmatprep.mubr.bf16.mxu1 %v1102_v54 }
  0x4b   :  { %565 = vmatmul.mubr.bf16.gmra.mrb[12].mxu0 %v1106_v57 }
  0x4c   :  { %747 = vmatmul.mubr.bf16.gmra.mrb[12].mxu1 %v1106_v57 }
  0xf6   :  { %v951_v4 = vpop.f32.mrb[0].mxu0 }
  0xf7   :  { %v979_v5 = vpop.f32.mrb[0].mxu1  ;;  %v952_v6 = vpop.f32.mrb[1].mxu0 }
  0xf8   :  { %v953_v7 = vadd.f32 %v952_v6, %v951_v4  ;;  %v980_v8 = vpop.f32.mrb[1].mxu1  ;;  %v954_v9 = vpop.f32.mrb[2].mxu0 }
  0xf9   :  { %v981_v10 = vadd.f32 %v980_v8, %v979_v5  ;;  %v982_v11 = vpop.f32.mrb[2].mxu1  ;;  %v955_v12 = vpop.f32.mrb[3].mxu0 }
  0xfa   :  { %v956_v13 = vadd.f32 %v955_v12, %v954_v9  ;;  %v983_v14 = vpop.f32.mrb[3].mxu1 }
  0xfb   :  { %v391_v15 = vmax.f32 %v953_v7, %v981_v10  ;;  %v984_v16 = vadd.f32 %v983_v14, %v982_v11 }
  0xfd   :  { %v392_v17 = vmax.f32 %v956_v13, %v984_v16 }
  0xfe   :  { %v957_v18 = vpop.f32.mrb[4].mxu0 }
  0xff   :  { %v985_v19 = vpop.f32.mrb[4].mxu1  ;;  %v958_v20 = vpop.f32.mrb[5].mxu0 }
 0x100   :  { %v959_v21 = vadd.f32 %v958_v20, %v957_v18  ;;  %v986_v22 = vpop.f32.mrb[5].mxu1  ;;  %v960_v23 = vpop.f32.mrb[6].mxu0 }
 0x101   :  { %v987_v24 = vadd.f32 %v986_v22, %v985_v19  ;;  %v988_v25 = vpop.f32.mrb[6].mxu1  ;;  %v961_v26 = vpop.f32.mrb[7].mxu0 }
 0x102   :  { %v962_v27 = vadd.f32 %v961_v26, %v960_v23  ;;  %v989_v28 = vpop.f32.mrb[7].mxu1 }
 0x103   :  { %v393_v29 = vmax.f32 %v959_v21, %v987_v24  ;;  %v990_v30 = vadd.f32 %v989_v28, %v988_v25 }
 0x105   :  { %v394_v31 = vmax.f32 %v962_v27, %v990_v30 }
 0x116   :  { %v1007_v32 = vpop.f32.mrb[8].mxu0 }
 0x117   :  { %v1035_v33 = vpop.f32.mrb[8].mxu1  ;;  %v1008_v34 = vpop.f32.mrb[9].mxu0 }
 0x118   :  { %v1009_v35 = vadd.f32 %v1008_v34, %v1007_v32  ;;  %v1036_v36 = vpop.f32.mrb[9].mxu1  ;;  %v1010_v37 = vpop.f32.mrb[10].mxu0 }
 0x119   :  { %v1037_v38 = vadd.f32 %v1036_v36, %v1035_v33  ;;  %v1038_v39 = vpop.f32.mrb[10].mxu1  ;;  %v1011_v40 = vpop.f32.mrb[11].mxu0 }
 0x11a   :  { %v573_v41 = vmax.f32 %v391_v15, %v1009_v35  ;;  %v1012_v42 = vadd.f32 %v1011_v40, %v1010_v37  ;;  %v1039_v43 = vpop.f32.mrb[11].mxu1 }
 0x11b   :  { %v1040_v44 = vadd.f32 %v1039_v43, %v1038_v39 }
 0x11c   :  { %v755_v45 = vmax.f32 %v573_v41, %v1037_v38  ;;  %v574_v46 = vmax.f32 %v392_v17, %v1012_v42 }
 0x11e   :  { %v759_v47 = vmax.f32 %v755_v45, 0.0  ;;  %v756_v48 = vmax.f32 %v574_v46, %v1040_v44  ;;  %v1013_v49 = vpop.f32.mrb[12].mxu0 }
 0x11f   :  { %v1041_v50 = vpop.f32.mrb[12].mxu1  ;;  %v1014_v51 = vpop.f32.mrb[13].mxu0 }
 0x120   :  { %763 = vst [vmem:[%s1362_s2] sm:$0xff] %v759_v47  ;;  %v760_v52 = vmax.f32 %v756_v48, 0.0  ;;  %v1015_v53 = vadd.f32 %v1014_v51, %v1013_v49  ;;  %v1042_v54 = vpop.f32.mrb[13].mxu1  ;;  %v1016_v55 = vpop.f32.mrb[14].mxu0 }
 0x121   :  { %v1043_v56 = vadd.f32 %v1042_v54, %v1041_v50  ;;  %v1044_v57 = vpop.f32.mrb[14].mxu1  ;;  %v1017_v58 = vpop.f32.mrb[15].mxu0 }
 0x122   :  { %764 = vst [vmem:[%s1362_s2 + $0x8] sm:$0xff] %v760_v52  ;;  %v575_v59 = vmax.f32 %v393_v29, %v1015_v53  ;;  %v1018_v60 = vadd.f32 %v1017_v58, %v1016_v55  ;;  %v1045_v61 = vpop.f32.mrb[15].mxu1 }
 0x123   :  { %v1046_v62 = vadd.f32 %v1045_v61, %v1044_v57 }
 0x124   :  { %v757_v63 = vmax.f32 %v575_v59, %v1043_v56  ;;  %v576_v0 = vmax.f32 %v394_v31, %v1018_v60 }
 0x126   :  { %v761_v1 = vmax.f32 %v757_v63, 0.0  ;;  %v758_v2 = vmax.f32 %v576_v0, %v1046_v62 }
 0x128   :  { %765 = vst [vmem:[%s1362_s2 + $0x10] sm:$0xff] %v761_v1  ;;  %v762_v3 = vmax.f32 %v758_v2, 0.0 }
 0x12a   :  { %766 = vst [vmem:[%s1362_s2 + $0x18] sm:$0xff] %v762_v3 }

</bundles_post_ra>
